<compile_context>
chip_gen: v6e
topology: v6e:2x2x1
jax: 0.10.0
libtpu: 0.0.40
codegen_flags: <defaults>
</compile_context>

<pallas_src>
import functools

import jax
import jax.numpy as jnp
from jax import lax
from jax.experimental import pallas as pl
from jax.experimental.pallas import tpu as pltpu


def _round_up(a, b):
    return (a + b - 1) // b * b


def _quantize_kernel(x_ref, esq_ref, embed_ref, quant_ref, idx_ref, loss_ref,
                     *, n_valid_rows, apply_mask):
    i = pl.program_id(0)

    f = x_ref[...].astype(jnp.float32)        # (tm, dim)
    e = embed_ref[...].astype(jnp.float32)    # (dim, n_embed)
    e_sq = esq_ref[...]                       # (1, n_embed), precomputed in wrapper

    tm = f.shape[0]
    n_embed = e.shape[1]

    # Distance matmul on the MXU.  The per-row ||f||^2 term is argmin-invariant,
    # so it is dropped entirely.
    scores = jnp.dot(f, e, preferred_element_type=jnp.float32)   # (tm, n_embed)
    dist = e_sq - 2.0 * scores                                   # (tm, n_embed)

    # argmin with first-occurrence tie-breaking (matches (-dist).max(1)).
    lane_iota = lax.broadcasted_iota(jnp.int32, (tm, n_embed), 1)
    min_dist = jnp.min(dist, axis=1, keepdims=True)              # (tm, 1)
    idx_col = jnp.min(jnp.where(dist == min_dist, lane_iota, n_embed),
                      axis=1, keepdims=True)                     # (tm, 1) int32

    # Codebook gather via MXU: onehot @ E.T  (exact: one 1 per row).
    onehot = (lane_iota == idx_col).astype(jnp.float32)          # (tm, n_embed)
    quant = lax.dot_general(onehot, e, (((1,), (1,)), ((), ())),
                            preferred_element_type=jnp.float32)  # (tm, dim)
    quant_ref[...] = quant.astype(quant_ref.dtype)

    # Lane-dense index row: (1, n_embed) code-iota @ onehot^T -> (1, tm) on the
    # MXU (exact: onehot is {0,1} and code ids << 2^24).  Avoids masked (tm, 1)
    # column stores and keeps the idx HBM writeback dense.
    code_iota = lax.broadcasted_iota(jnp.int32, (1, n_embed), 1).astype(jnp.float32)
    idx_row = lax.dot_general(code_iota, onehot, (((1,), (1,)), ((), ())),
                              preferred_element_type=jnp.float32)  # (1, tm)
    idx_ref[...] = idx_row.astype(jnp.int32)

    # Per-tile smooth_l1 partial, reduced over rows only -> (1, dim) lane layout.
    # Final mean + 0.1 scale happens once in the wrapper (keeps grid 'parallel').
    d = (f - quant) * 10.0
    ad = jnp.abs(d)
    loss_elem = jnp.where(ad < 1.0, 0.5 * d * d, ad - 0.5)       # (tm, dim)
    if apply_mask:
        row_iota = lax.broadcasted_iota(jnp.int32, (tm, 1), 0)
        valid = (i * tm + row_iota) < n_valid_rows               # (tm, 1)
        loss_elem = jnp.where(valid, loss_elem, 0.0)
    loss_ref[...] = jnp.sum(loss_elem, axis=0, keepdims=True)    # (1, dim)


def quantize_forward(x, embed, *, tm=512):
    """x: (B, T, dim) float32; embed: (dim, n_embed) float32."""
    B, T, dim = x.shape
    dim_e, n_embed = embed.shape
    assert dim == dim_e
    N = B * T

    # Large row tiles (HBM-roofline friendly), clamped to the problem size.
    tm = min(tm, _round_up(N, 8))
    n_pad = _round_up(N, tm)
    num_tiles = n_pad // tm

    flat = x.reshape(N, dim)
    if n_pad != N:
        flat = jnp.pad(flat, ((0, n_pad - N), (0, 0)))

    # Grid-invariant ||E_j||^2, computed once outside the grid loop.
    e_sq = jnp.sum(embed.astype(jnp.float32) ** 2, axis=0, keepdims=True)

    kernel = functools.partial(_quantize_kernel,
                               n_valid_rows=N, apply_mask=(n_pad != N))

    # VMEM budget: double-buffered blocks + (tm, n_embed) f32 temporaries.
    # NOTE: the codebook block has a constant index_map and is never re-fetched;
    # single-buffering it (pl.Buffered(1)) would free dim*n_embed*4 more bytes.
    block_bytes = (2 * tm * dim * 4          # x in
                   + 2 * dim * n_embed * 4   # embed in
                   + 2 * n_embed * 4         # e_sq in
                   + 2 * tm * dim * 4        # quant out
                   + 2 * tm * 4              # idx out
                   + 2 * dim * 4)            # loss partial out
    temp_bytes = 4 * tm * n_embed * 4        # dist / iota / onehot / scores
    est = block_bytes + temp_bytes + (2 << 20)
    vmem_limit = min(est + (4 << 20), 48 << 20) if est > (30 << 20) else None

    quant_flat, idx_tiles, loss_tiles = pl.pallas_call(
        kernel,
        out_shape=(
            jax.ShapeDtypeStruct((n_pad, dim), x.dtype),
            jax.ShapeDtypeStruct((num_tiles, tm), jnp.int32),
            jax.ShapeDtypeStruct((num_tiles, dim), jnp.float32),
        ),
        grid_spec=pltpu.PrefetchScalarGridSpec(
            num_scalar_prefetch=0,
            grid=(num_tiles,),
            in_specs=[
                pl.BlockSpec((tm, dim), lambda i: (i, 0)),        # x rows
                pl.BlockSpec((1, n_embed), lambda i: (0, 0)),     # ||E||^2
                pl.BlockSpec((dim, n_embed), lambda i: (0, 0)),   # codebook
            ],
            out_specs=[
                pl.BlockSpec((tm, dim), lambda i: (i, 0)),        # quantize
                pl.BlockSpec((1, tm), lambda i: (i, 0)),          # idx (lane-dense)
                pl.BlockSpec((1, dim), lambda i: (i, 0)),         # loss partial
            ],
        ),
        compiler_params=pltpu.CompilerParams(
            dimension_semantics=("parallel",),   # no cross-tile state -> megacore OK
            vmem_limit_bytes=vmem_limit),
    )(flat, e_sq, embed)

    quantize = quant_flat[:N].reshape(B, T, dim)   # == x + (quant - x).detach()
    embed_ind = idx_tiles.reshape(-1)[:N].reshape(B, T)
    diff = jnp.sum(loss_tiles) * (0.1 / (N * dim))
    return quantize, diff, embed_ind


if __name__ == "__main__":
    key = jax.random.PRNGKey(0)
    k_x, k_e = jax.random.split(key)

    B, T, dim, n_embed = 2, 128, 32, 128
    x = jax.random.normal(k_x, (B, T, dim), dtype=jnp.float32)
    # deterministic "randn(dim, n_embed)" codebook
    embed = jax.random.normal(k_e, (dim, n_embed), dtype=jnp.float32)

    quantize, diff, embed_ind = quantize_forward(x, embed)
    jax.block_until_ready((quantize, diff, embed_ind))

    assert quantize.shape == (B, T, dim)
    assert embed_ind.shape == (B, T)
    assert diff.shape == ()
    assert bool(jnp.isfinite(diff))

    # Loose pure-JAX reference check (fp near-ties may flip a handful of codes).
    flat = x.reshape(-1, dim)
    ref_dist = (jnp.sum(flat * flat, axis=1, keepdims=True)
                - 2.0 * flat @ embed
                + jnp.sum(embed * embed, axis=0, keepdims=True))
    ref_ind = jnp.argmin(ref_dist, axis=1).reshape(B, T)
    ref_quant = embed.T[ref_ind]
    d = (x - ref_quant) * 10.0
    ref_loss = jnp.where(jnp.abs(d) < 1.0, 0.5 * d * d, jnp.abs(d) - 0.5)
    ref_diff = jnp.mean(ref_loss) * 0.1
    match = float(jnp.mean((embed_ind == ref_ind).astype(jnp.float32)))
    assert match > 0.99
    assert abs(float(diff) - float(ref_diff)) <= 0.05 * max(float(ref_diff), 1e-6) + 1e-5

    print("KERNEL_OK")
</pallas_src>

<mosaic_0001>
module attributes {stable_mosaic.version = 11 : i64} {
  func.func @_quantize_kernel(%arg0: i32, %arg1: memref<256x32xf32, #tpu.memory_space<vmem>>, %arg2: memref<1x128xf32, #tpu.memory_space<vmem>>, %arg3: memref<32x128xf32, #tpu.memory_space<vmem>>, %arg4: memref<256x32xf32, #tpu.memory_space<vmem>>, %arg5: memref<1x256xi32, #tpu.memory_space<vmem>>, %arg6: memref<1x32xf32, #tpu.memory_space<vmem>>) attributes {dimension_semantics = [#tpu.dimension_semantics<parallel>], iteration_bounds = array<i64: 1>, scalar_prefetch = 0 : i64, scratch_operands = 0 : i64, tpu.core_type = #tpu.core_type<tc>, window_params = [{transform_indices = @transform_0, window_bounds = array<i64: 256, 32>}, {pipeline_mode = #tpu.pipeline_mode<synchronous>, transform_indices = @transform_1, window_bounds = array<i64: 1, 128>}, {pipeline_mode = #tpu.pipeline_mode<synchronous>, transform_indices = @transform_2, window_bounds = array<i64: 32, 128>}, {transform_indices = @transform_3, window_bounds = array<i64: 256, 32>}, {transform_indices = @transform_4, window_bounds = array<i64: 1, 256>}, {transform_indices = @transform_5, window_bounds = array<i64: 1, 32>}]} {
    %c0 = arith.constant 0 : index
    %c0_0 = arith.constant 0 : index
    %0 = vector.load %arg1[%c0, %c0_0] : memref<256x32xf32, #tpu.memory_space<vmem>>, vector<256x32xf32>
    %c0_1 = arith.constant 0 : index
    %c0_2 = arith.constant 0 : index
    %1 = vector.load %arg3[%c0_1, %c0_2] : memref<32x128xf32, #tpu.memory_space<vmem>>, vector<32x128xf32>
    %c0_3 = arith.constant 0 : index
    %c0_4 = arith.constant 0 : index
    %2 = vector.load %arg2[%c0_3, %c0_4] : memref<1x128xf32, #tpu.memory_space<vmem>>, vector<1x128xf32>
    %cst = arith.constant dense<0.000000e+00> : vector<256x128xf32>
    %3 = tpu.matmul %0, %1, %cst {dimension_numbers = #tpu.dot_dimension_numbers<[1], [0], [0], [1], [0, 0, 1, 1], [], []>} : vector<256x32xf32>, vector<32x128xf32>, vector<256x128xf32> -> vector<256x128xf32>
    %cst_5 = arith.constant 2.000000e+00 : f32
    %4 = vector.broadcast %cst_5 : f32 to vector<256x128xf32>
    %5 = arith.mulf %4, %3 : vector<256x128xf32>
    %6 = vector.broadcast %2 : vector<1x128xf32> to vector<256x128xf32>
    %7 = arith.subf %6, %5 : vector<256x128xf32>
    %8 = tpu.iota {dimensions = array<i32: 1>} : vector<256x128xi32>
    %cst_6 = arith.constant dense<0x7F800000> : vector<256xf32>
    %9 = vector.multi_reduction <minimumf>, %7, %cst_6 [1] : vector<256x128xf32> to vector<256xf32>
    %10 = vector.shape_cast %9 : vector<256xf32> to vector<256x1xf32>
    %11 = vector.broadcast %10 : vector<256x1xf32> to vector<256x128xf32>
    %12 = arith.cmpf oeq, %7, %11 : vector<256x128xf32>
    %c128_i32 = arith.constant 128 : i32
    %13 = vector.broadcast %c128_i32 : i32 to vector<256x128xi32>
    %14 = arith.select %12, %8, %13 : vector<256x128xi1>, vector<256x128xi32>
    %cst_7 = arith.constant dense<2147483647> : vector<256xi32>
    %15 = vector.multi_reduction <minsi>, %14, %cst_7 [1] : vector<256x128xi32> to vector<256xi32>
    %16 = vector.shape_cast %15 : vector<256xi32> to vector<256x1xi32>
    %17 = vector.broadcast %16 : vector<256x1xi32> to vector<256x128xi32>
    %18 = arith.cmpi eq, %8, %17 : vector<256x128xi32>
    %19 = arith.extui %18 : vector<256x128xi1> to vector<256x128xi32>
    %20 = arith.sitofp %19 : vector<256x128xi32> to vector<256x128xf32>
    %cst_8 = arith.constant dense<0.000000e+00> : vector<256x32xf32>
    %21 = tpu.matmul %20, %1, %cst_8 {dimension_numbers = #tpu.dot_dimension_numbers<[1], [1], [0], [0], [0, 0, 1, 0], [], []>} : vector<256x128xf32>, vector<32x128xf32>, vector<256x32xf32> -> vector<256x32xf32>
    %c0_9 = arith.constant 0 : index
    %c0_10 = arith.constant 0 : index
    %22 = vector.load %arg4[%c0_9, %c0_10] : memref<256x32xf32, #tpu.memory_space<vmem>>, vector<256x32xf32>
    tpu.vector_store %arg4[%c0_9, %c0_10], %21 {strides = array<i32>} : memref<256x32xf32, #tpu.memory_space<vmem>>, vector<256x32xf32>,
    %23 = tpu.iota {dimensions = array<i32: 1>} : vector<1x128xi32>
    %24 = arith.sitofp %23 : vector<1x128xi32> to vector<1x128xf32>
    %cst_11 = arith.constant dense<0.000000e+00> : vector<1x256xf32>
    %25 = tpu.matmul %24, %20, %cst_11 {dimension_numbers = #tpu.dot_dimension_numbers<[1], [1], [0], [0], [0, 0, 1, 0], [], []>} : vector<1x128xf32>, vector<256x128xf32>, vector<1x256xf32> -> vector<1x256xf32>
    %26 = arith.fptosi %25 : vector<1x256xf32> to vector<1x256xi32>
    %c0_12 = arith.constant 0 : index
    %c0_13 = arith.constant 0 : index
    %27 = vector.load %arg5[%c0_12, %c0_13] : memref<1x256xi32, #tpu.memory_space<vmem>>, vector<1x256xi32>
    tpu.vector_store %arg5[%c0_12, %c0_13], %26 {strides = array<i32>} : memref<1x256xi32, #tpu.memory_space<vmem>>, vector<1x256xi32>,
    %28 = arith.subf %0, %21 : vector<256x32xf32>
    %cst_14 = arith.constant 1.000000e+01 : f32
    %29 = vector.broadcast %cst_14 : f32 to vector<256x32xf32>
    %30 = arith.mulf %28, %29 : vector<256x32xf32>
    %31 = math.absf %30 : vector<256x32xf32>
    %cst_15 = arith.constant 1.000000e+00 : f32
    %32 = vector.broadcast %cst_15 : f32 to vector<256x32xf32>
    %33 = arith.cmpf olt, %31, %32 : vector<256x32xf32>
    %cst_16 = arith.constant 5.000000e-01 : f32
    %34 = vector.broadcast %cst_16 : f32 to vector<256x32xf32>
    %35 = arith.mulf %34, %30 : vector<256x32xf32>
    %36 = arith.mulf %35, %30 : vector<256x32xf32>
    %cst_17 = arith.constant 5.000000e-01 : f32
    %37 = vector.broadcast %cst_17 : f32 to vector<256x32xf32>
    %38 = arith.subf %31, %37 : vector<256x32xf32>
    %39 = arith.select %33, %36, %38 : vector<256x32xi1>, vector<256x32xf32>
    %cst_18 = arith.constant dense<0.000000e+00> : vector<32xf32>
    %40 = vector.multi_reduction <add>, %39, %cst_18 [0] : vector<256x32xf32> to vector<32xf32>
    %41 = vector.shape_cast %40 : vector<32xf32> to vector<1x32xf32>
    %c0_19 = arith.constant 0 : index
    %c0_20 = arith.constant 0 : index
    %42 = vector.load %arg6[%c0_19, %c0_20] : memref<1x32xf32, #tpu.memory_space<vmem>>, vector<1x32xf32>
    tpu.vector_store %arg6[%c0_19, %c0_20], %41 {strides = array<i32>} : memref<1x32xf32, #tpu.memory_space<vmem>>, vector<1x32xf32>,
    return
  }
  func.func @transform_0(%arg0: i32) -> (i32, i32) {
    %c0_i32 = arith.constant 0 : i32
    %c0_i32_0 = arith.constant 0 : i32
    return %arg0, %c0_i32 : i32, i32
  }
  func.func @transform_1(%arg0: i32) -> (i32, i32) {
    %c0_i32 = arith.constant 0 : i32
    %c0_i32_0 = arith.constant 0 : i32
    %c0_i32_1 = arith.constant 0 : i32
    return %c0_i32, %c0_i32_0 : i32, i32
  }
  func.func @transform_2(%arg0: i32) -> (i32, i32) {
    %c0_i32 = arith.constant 0 : i32
    %c0_i32_0 = arith.constant 0 : i32
    %c0_i32_1 = arith.constant 0 : i32
    return %c0_i32, %c0_i32_0 : i32, i32
  }
  func.func @transform_3(%arg0: i32) -> (i32, i32) {
    %c0_i32 = arith.constant 0 : i32
    %c0_i32_0 = arith.constant 0 : i32
    return %arg0, %c0_i32 : i32, i32
  }
  func.func @transform_4(%arg0: i32) -> (i32, i32) {
    %c0_i32 = arith.constant 0 : i32
    %c0_i32_0 = arith.constant 0 : i32
    return %arg0, %c0_i32 : i32, i32
  }
  func.func @transform_5(%arg0: i32) -> (i32, i32) {
    %c0_i32 = arith.constant 0 : i32
    %c0_i32_0 = arith.constant 0 : i32
    return %arg0, %c0_i32 : i32, i32
  }
}

</mosaic_0001>

<bundles_post_ra>
// kernel: tpu_custom_call.1
= control target key start
LH: loop header
LB: loop body
LE: loop exit
PB: predicated region body
PF: predicated region fallthrough
CT: control target
= control target key end

     0   :  { %11 = vsyncpa [#allocation3], 0  ;;  %vm3837_vm0 = vcmask 261120   ;;  %s3817_s0 = inlined_call_operand.vmem [shape: f32[256,32], index: 0, kind: input, shape index: {}]   ;;  %s3818_s1 = inlined_call_operand.vmem [shape: f32[1,128], index: 1, kind: input, shape index: {}]   ;;  %s3819_s2 = inlined_call_operand.vmem [shape: f32[32,128], index: 2, kind: input, shape index: {}]   ;;  %s3820_s3 = inlined_call_operand.vmem [shape: f32[256,32], index: 3, kind: output, shape index: {0}]   ;;  %s3821_s4 = inlined_call_operand.hbm [shape: s32[1,256], index: 4, kind: output, shape index: {1}]   ;;  %s3822_s5 = inlined_call_operand.hbm [shape: f32[1,32], index: 5, kind: output, shape index: {2}]  }
   0x1   :  { %v54_v0 = vld [vmem:[%s3819_s2 + $0x18] sm:$0xff]  ;;  %v53_v1 = vld [vmem:[%s3819_s2 + $0x10] sm:$0xff]  ;;  %v19_v2 = vld [vmem:[%s3817_s0] sm:$0xff] }
   0x2   :  { %2099 = vmatprep.subr.mxu0 %v54_v0  ;;  %2155 = vmatprep.subr.mxu1 %v54_v0  ;;  %v52_v3 = vld [vmem:[%s3819_s2 + $0x8] sm:$0xff]  ;;  %v51_v4 = vld [vmem:[%s3819_s2] sm:$0xff]  ;;  %v21_v6 = vld [vmem:[%s3817_s0 + $0x10] sm:$0xff] }
   0x3   :  { %2100 = vmatpush3.msra.mxu0 %v54_v0  ;;  %2107 = vmatprep.mubr.msk.f32.mxu0 %vm3837_vm0, %v19_v2  ;;  %v20_v5 = vld [vmem:[%s3817_s0 + $0x8] sm:$0xff]  ;;  %v22_v7 = vld [vmem:[%s3817_s0 + $0x18] sm:$0xff]  ;;  %v23_v8 = vld [vmem:[%s3817_s0 + $0x20] sm:$0xff] }
   0x4   :  { %2101 = vmatprep.subr.mxu0 %v53_v1  ;;  %2156 = vmatpush3.xpose.msra.mxu1 %v54_v0 }
   0x5   :  { %2102 = vmatpush3.msra.mxu0 %v53_v1  ;;  %2157 = vmatprep.subr.mxu1 %v53_v1 }
   0x6   :  { %2103 = vmatprep.subr.mxu0 %v52_v3 }
   0x7   :  { %2104 = vmatpush3.msra.mxu0 %v52_v3 }
   0x8   :  { %2105 = vmatprep.subr.mxu0 %v51_v4  ;;  %2158 = vmatpush3.xpose.msra.mxu1 %v53_v1 }
   0x9   :  { %2106 = vmatpush3.msra.mxu0 %v51_v4  ;;  %2159 = vmatprep.subr.mxu1 %v52_v3 }
   0xa   :  { %2108 = vmatmul.mubr.msk.f32.vlgmr.msra.gmra.mxu0 %vm3837_vm0, %v20_v5 }
   0xb   :  { %2110 = vmatprep.mubr.msk.f32.mxu0 %vm3837_vm0, %v21_v6 }
   0xc   :  { %2160 = vmatpush3.xpose.msra.mxu1 %v52_v3 }
   0xd   :  { %2161 = vmatprep.subr.mxu1 %v51_v4 }
   0xe   :  { %12 = vsyncpa [#allocation5], 0  ;;  %2111 = vmatmul.mubr.msk.f32.gmra.mxu0 %vm3837_vm0, %v22_v7  ;;  %v24_v9 = vld [vmem:[%s3817_s0 + $0x28] sm:$0xff]  ;;  %v25_v10 = vld [vmem:[%s3817_s0 + $0x30] sm:$0xff] }
   0xf   :  { %2113 = vmatprep.mubr.msk.f32.mxu0 %vm3837_vm0, %v23_v8  ;;  %v26_v11 = vld [vmem:[%s3817_s0 + $0x38] sm:$0xff]  ;;  %v27_v12 = vld [vmem:[%s3817_s0 + $0x40] sm:$0xff]  ;;  %v28_v13 = vld [vmem:[%s3817_s0 + $0x48] sm:$0xff] }
  0x10   :  { %2162 = vmatpush3.xpose.msra.mxu1 %v51_v4  ;;  %v29_v14 = vld [vmem:[%s3817_s0 + $0x50] sm:$0xff]  ;;  %v30_v15 = vld [vmem:[%s3817_s0 + $0x58] sm:$0xff]  ;;  %v31_v16 = vld [vmem:[%s3817_s0 + $0x60] sm:$0xff] }
  0x11   :  { %v32_v17 = vld [vmem:[%s3817_s0 + $0x68] sm:$0xff]  ;;  %v33_v18 = vld [vmem:[%s3817_s0 + $0x70] sm:$0xff]  ;;  %v34_v19 = vld [vmem:[%s3817_s0 + $0x78] sm:$0xff] }
  0x12   :  { %2114 = vmatmul.mubr.msk.f32.gmra.mxu0 %vm3837_vm0, %v24_v9  ;;  %v35_v20 = vld [vmem:[%s3817_s0 + $0x80] sm:$0xff]  ;;  %v36_v21 = vld [vmem:[%s3817_s0 + $0x88] sm:$0xff]  ;;  %v37_v22 = vld [vmem:[%s3817_s0 + $0x90] sm:$0xff] }
  0x13   :  { %2116 = vmatprep.mubr.msk.f32.mxu0 %vm3837_vm0, %v25_v10  ;;  %v38_v23 = vld [vmem:[%s3817_s0 + $0x98] sm:$0xff]  ;;  %v39_v24 = vld [vmem:[%s3817_s0 + $0xa0] sm:$0xff]  ;;  %v40_v25 = vld [vmem:[%s3817_s0 + $0xa8] sm:$0xff] }
  0x14   :  { %v41_v26 = vld [vmem:[%s3817_s0 + $0xb0] sm:$0xff]  ;;  %v42_v27 = vld [vmem:[%s3817_s0 + $0xb8] sm:$0xff]  ;;  %v43_v28 = vld [vmem:[%s3817_s0 + $0xc0] sm:$0xff] }
  0x15   :  { %v44_v29 = vld [vmem:[%s3817_s0 + $0xc8] sm:$0xff]  ;;  %v45_v30 = vld [vmem:[%s3817_s0 + $0xd0] sm:$0xff]  ;;  %v46_v31 = vld [vmem:[%s3817_s0 + $0xd8] sm:$0xff] }
  0x16   :  { %2117 = vmatmul.mubr.msk.f32.gmra.mxu0 %vm3837_vm0, %v26_v11  ;;  %v47_v32 = vld [vmem:[%s3817_s0 + $0xe0] sm:$0xff]  ;;  %v48_v33 = vld [vmem:[%s3817_s0 + $0xe8] sm:$0xff]  ;;  %v49_v34 = vld [vmem:[%s3817_s0 + $0xf0] sm:$0xff] }
  0x17   :  { %2119 = vmatprep.mubr.msk.f32.mxu0 %vm3837_vm0, %v27_v12  ;;  %v50_v35 = vld [vmem:[%s3817_s0 + $0xf8] sm:$0xff]  ;;  %v2472_v37 = vld [vmem:[%s3818_s1] ss:$0 sm:$0xff] }
  0x1a   :  { %2120 = vmatmul.mubr.msk.f32.gmra.mxu0 %vm3837_vm0, %v28_v13 }
  0x1b   :  { %2122 = vmatprep.mubr.msk.f32.mxu0 %vm3837_vm0, %v29_v14 }
  0x1e   :  { %2123 = vmatmul.mubr.msk.f32.gmra.mxu0 %vm3837_vm0, %v30_v15 }
  0x1f   :  { %2125 = vmatprep.mubr.msk.f32.mxu0 %vm3837_vm0, %v31_v16 }
  0x22   :  { %2126 = vmatmul.mubr.msk.f32.gmra.mxu0 %vm3837_vm0, %v32_v17 }
  0x23   :  { %2128 = vmatprep.mubr.msk.f32.mxu0 %vm3837_vm0, %v33_v18 }
  0x26   :  { %2129 = vmatmul.mubr.msk.f32.gmra.mxu0 %vm3837_vm0, %v34_v19 }
  0x27   :  { %2131 = vmatprep.mubr.msk.f32.mxu0 %vm3837_vm0, %v35_v20 }
  0x2a   :  { %2132 = vmatmul.mubr.msk.f32.gmra.mxu0 %vm3837_vm0, %v36_v21 }
  0x2b   :  { %2134 = vmatprep.mubr.msk.f32.mxu0 %vm3837_vm0, %v37_v22 }
  0x2e   :  { %2135 = vmatmul.mubr.msk.f32.gmra.mxu0 %vm3837_vm0, %v38_v23 }
  0x2f   :  { %2137 = vmatprep.mubr.msk.f32.mxu0 %vm3837_vm0, %v39_v24 }
  0x32   :  { %2138 = vmatmul.mubr.msk.f32.gmra.mxu0 %vm3837_vm0, %v40_v25 }
  0x33   :  { %2140 = vmatprep.mubr.msk.f32.mxu0 %vm3837_vm0, %v41_v26 }
  0x36   :  { %2141 = vmatmul.mubr.msk.f32.gmra.mxu0 %vm3837_vm0, %v42_v27 }
  0x37   :  { %2143 = vmatprep.mubr.msk.f32.mxu0 %vm3837_vm0, %v43_v28 }
  0x3a   :  { %2144 = vmatmul.mubr.msk.f32.gmra.mxu0 %vm3837_vm0, %v44_v29 }
  0x3b   :  { %2146 = vmatprep.mubr.msk.f32.mxu0 %vm3837_vm0, %v45_v30 }
  0x3e   :  { %2147 = vmatmul.mubr.msk.f32.gmra.mxu0 %vm3837_vm0, %v46_v31 }
  0x3f   :  { %2149 = vmatprep.mubr.msk.f32.mxu0 %vm3837_vm0, %v47_v32 }
  0x42   :  { %2150 = vmatmul.mubr.msk.f32.gmra.mxu0 %vm3837_vm0, %v48_v33 }
  0x43   :  { %2152 = vmatprep.mubr.msk.f32.mxu0 %vm3837_vm0, %v49_v34 }
  0x46   :  { %2153 = vmatmul.mubr.msk.f32.gmra.mxu0 %vm3837_vm0, %v50_v35 }
  0xca   :  { %v2109_v36 = vpop.f32.mrf.mxu0 }
  0xcb   :  { %v379_v38 = vmul.f32 2.0, %v2109_v36 }
  0xcc   :  { %v219_v39 = vpop.f32.mrf.mxu0 }
  0xcd   :  { %v378_v40 = vmul.f32 2.0, %v219_v39  ;;  %v2475_v41 = vsub.f32 %v2472_v37, %v379_v38 }
  0xce   :  { %v2112_v42 = vpop.f32.mrf.mxu0 }
  0xcf   :  { %v381_v43 = vmul.f32 2.0, %v2112_v42  ;;  %452 = vmin.xlane.f32.xlu0 %v2475_v41  ;;  %v2479_v46 = vsub.f32 %v2472_v37, %v378_v40 }
  0xd0   :  { %v229_v44 = vpop.f32.mrf.mxu0 }
  0xd1   :  { %v380_v45 = vmul.f32 2.0, %v229_v44  ;;  %v2482_v47 = vsub.f32 %v2472_v37, %v381_v43 }
  0xd2   :  { %v2115_v48 = vpop.f32.mrf.mxu0 }
  0xd3   :  { %450 = vmin.xlane.f32.xlu0 %v2479_v46  ;;  %456 = vmin.xlane.f32.xlu1 %v2482_v47  ;;  %v383_v50 = vmul.f32 2.0, %v2115_v48  ;;  %v2487_v52 = vsub.f32 %v2472_v37, %v380_v45 }
  0xd4   :  { %v239_v49 = vpop.f32.mrf.mxu0 }
  0xd5   :  { %v382_v51 = vmul.f32 2.0, %v239_v49  ;;  %v2495_v58 = vsub.f32 %v2472_v37, %v383_v50 }
  0xd6   :  { %v2118_v53 = vpop.f32.mrf.mxu0 }
  0xd7   :  { %454 = vmin.xlane.f32.xlu1 %v2487_v52  ;;  %v2491_v54 = vsub.f32 %v2472_v37, %v382_v51  ;;  %v385_v56 = vmul.f32 2.0, %v2118_v53 }
  0xd8   :  { %v249_v55 = vpop.f32.mrf.mxu0 }
  0xd9   :  { %v384_v57 = vmul.f32 2.0, %v249_v55  ;;  %458 = vmin.xlane.f32.xlu0 %v2491_v54  ;;  %v2503_v0 = vsub.f32 %v2472_v37, %v385_v56 }
  0xda   :  { %v2121_v59 = vpop.f32.mrf.mxu0 }
  0xdb   :  { %460 = vmin.xlane.f32.xlu1 %v2495_v58  ;;  %v2499_v60 = vsub.f32 %v2472_v37, %v384_v57  ;;  %v387_v62 = vmul.f32 2.0, %v2121_v59 }
  0xdc   :  { %v259_v61 = vpop.f32.mrf.mxu0 }
  0xdd   :  { %v386_v63 = vmul.f32 2.0, %v259_v61  ;;  %462 = vmin.xlane.f32.xlu0 %v2499_v60  ;;  %v2511_v6 = vsub.f32 %v2472_v37, %v387_v62 }
  0xde   :  { %v2124_v1 = vpop.f32.mrf.mxu0 }
  0xdf   :  { %464 = vmin.xlane.f32.xlu1 %v2503_v0  ;;  %v2507_v2 = vsub.f32 %v2472_v37, %v386_v63  ;;  %v389_v4 = vmul.f32 2.0, %v2124_v1 }
  0xe0   :  { %v269_v3 = vpop.f32.mrf.mxu0 }
  0xe1   :  { %v388_v5 = vmul.f32 2.0, %v269_v3  ;;  %466 = vmin.xlane.f32.xlu0 %v2507_v2  ;;  %v2519_v11 = vsub.f32 %v2472_v37, %v389_v4 }
  0xe2   :  { %v2127_v7 = vpop.f32.mrf.mxu0 }
  0xe3   :  { %468 = vmin.xlane.f32.xlu1 %v2511_v6  ;;  %v2515_v8 = vsub.f32 %v2472_v37, %v388_v5  ;;  %v391_v10 = vmul.f32 2.0, %v2127_v7 }
  0xe4   :  { %v279_v9 = vpop.f32.mrf.mxu0 }
  0xe5   :  { %470 = vmin.xlane.f32.xlu0 %v2515_v8  ;;  %v2523_v15 = vsub.f32 %v2472_v37, %v391_v10  ;;  %v390_v49 = vmul.f32 2.0, %v279_v9 }
  0xe6   :  { %v2130_v12 = vpop.f32.mrf.mxu0 }
  0xe7   :  { %472 = vmin.xlane.f32.xlu1 %v2519_v11  ;;  %v393_v14 = vmul.f32 2.0, %v2130_v12  ;;  %v2559_v56 = vsub.f32 %v2472_v37, %v390_v49 }
  0xe8   :  { %v289_v13 = vpop.f32.mrf.mxu0 }
  0xe9   :  { %v392_v18 = vmul.f32 2.0, %v289_v13  ;;  %v2527_v19 = vsub.f32 %v2472_v37, %v393_v14 }
  0xea   :  { %v2133_v16 = vpop.f32.mrf.mxu0 }
  0xeb   :  { %476 = vmin.xlane.f32.xlu1 %v2523_v15  ;;  %v2531_v22 = vsub.f32 %v2472_v37, %v392_v18  ;;  %v395_v61 = vmul.f32 2.0, %v2133_v16 }
  0xec   :  { %v299_v17 = vpop.f32.mrf.mxu0 }
  0xed   :  { %v394_v38 = vmul.f32 2.0, %v299_v17  ;;  %v2575_v4 = vsub.f32 %v2472_v37, %v395_v61 }
  0xee   :  { %v2136_v20 = vpop.f32.mrf.mxu0 }
  0xef   :  { %480 = vmin.xlane.f32.xlu1 %v2527_v19  ;;  %v2547_v48 = vsub.f32 %v2472_v37, %v394_v38  ;;  %v397_v51 = vmul.f32 2.0, %v2136_v20  ;;  %v3823_v20 = vlaneseq }
  0xf0   :  { %v309_v21 = vpop.f32.mrf.mxu0 }
  0xf1   :  { %v2563_v59 = vsub.f32 %v2472_v37, %v397_v51  ;;  %v396_v3 = vmul.f32 2.0, %v309_v21  ;;  %v2603_v21 = vand.u32 127, %v3823_v20 }
  0xf2   :  { %v2139_v23 = vpop.f32.mrf.mxu0 }
  0xf3   :  { %478 = vmin.xlane.f32.xlu1 %v2531_v22  ;;  %v2583_v10 = vsub.f32 %v2472_v37, %v396_v3  ;;  %v399_v13 = vmul.f32 2.0, %v2139_v23  ;;  %3847 = vst [vmem:[#allocation8_spill] sm:$0xff] %v2603_v21 }
  0xf4   :  { %v319_v24 = vpop.f32.mrf.mxu0 }
  0xf5   :  { %v398_v57 = vmul.f32 2.0, %v319_v24  ;;  %v2595_v17 = vsub.f32 %v2472_v37, %v399_v13 }
  0xf6   :  { %v2142_v25 = vpop.f32.mrf.mxu0 }
  0xf7   :  { %v2571_v1 = vsub.f32 %v2472_v37, %v398_v57  ;;  %v401_v5 = vmul.f32 2.0, %v2142_v25 }
  0xf8   :  { %v329_v26 = vpop.f32.mrf.mxu0 }
  0xf9   :  { %v2587_v12 = vsub.f32 %v2472_v37, %v401_v5  ;;  %v400_v16 = vmul.f32 2.0, %v329_v26 }
  0xfa   :  { %v2145_v27 = vpop.f32.mrf.mxu0 }
  0xfb   :  { %v403_v9 = vmul.f32 2.0, %v2145_v27  ;;  %v2599_v18 = vsub.f32 %v2472_v37, %v400_v16 }
  0xfc   :  { %v339_v28 = vpop.f32.mrf.mxu0 }
  0xfd   :  { %v402_v63 = vmul.f32 2.0, %v339_v28  ;;  %v2591_v14 = vsub.f32 %v2472_v37, %v403_v9 }
  0xfe   :  { %v2148_v29 = vpop.f32.mrf.mxu0 }
  0xff   :  { %v405_v55 = vmul.f32 2.0, %v2148_v29  ;;  %v2579_v7 = vsub.f32 %v2472_v37, %v402_v63 }
 0x100   :  { %v349_v30 = vpop.f32.mrf.mxu0 }
 0x101   :  { %v404_v45 = vmul.f32 2.0, %v349_v30  ;;  %v2567_v62 = vsub.f32 %v2472_v37, %v405_v55 }
 0x102   :  { %v2151_v31 = vpop.f32.mrf.mxu0 }
 0x103   :  { %v407_v32 = vmul.f32 2.0, %v2151_v31  ;;  %v2555_v53 = vsub.f32 %v2472_v37, %v404_v45 }
 0x104   :  { %v359_v33 = vpop.f32.mrf.mxu0 }
 0x105   :  { %v406_v34 = vmul.f32 2.0, %v359_v33  ;;  %v2535_v35 = vsub.f32 %v2472_v37, %v407_v32 }
 0x106   :  { %v2154_v36 = vpop.f32.mrf.mxu0 }
 0x107   :  { %v409_v39 = vmul.f32 2.0, %v2154_v36  ;;  %508 = vmin.xlane.f32.xlu0 %v2535_v35  ;;  %v2539_v40 = vsub.f32 %v2472_v37, %v406_v34 }
 0x108   :  { %v369_v42 = vpop.f32.mrf.mxu0 }
 0x109   :  { %v408_v43 = vmul.f32 2.0, %v369_v42  ;;  %506 = vmin.xlane.f32.xlu1 %v2539_v40  ;;  %v2543_v44 = vsub.f32 %v2472_v37, %v409_v39 }
 0x10b   :  { %512 = vmin.xlane.f32.xlu0 %v2543_v44  ;;  %v2551_v50 = vsub.f32 %v2472_v37, %v408_v43 }
 0x10d   :  { %482 = vmin.xlane.f32.xlu1 %v2547_v48 }
 0x10f   :  { %510 = vmin.xlane.f32.xlu0 %v2551_v50 }
 0x111   :  { %502 = vmin.xlane.f32.xlu1 %v2555_v53 }
 0x113   :  { %474 = vmin.xlane.f32.xlu0 %v2559_v56 }
 0x115   :  { %488 = vmin.xlane.f32.xlu1 %v2563_v59 }
 0x117   :  { %504 = vmin.xlane.f32.xlu0 %v2567_v62 }
 0x119   :  { %490 = vmin.xlane.f32.xlu1 %v2571_v1 }
 0x11b   :  { %484 = vmin.xlane.f32.xlu0 %v2575_v4 }
 0x11d   :  { %498 = vmin.xlane.f32.xlu1 %v2579_v7 }
 0x11f   :  { %486 = vmin.xlane.f32.xlu0 %v2583_v10 }
 0x121   :  { %496 = vmin.xlane.f32.xlu1 %v2587_v12 }
 0x123   :  { %500 = vmin.xlane.f32.xlu0 %v2591_v14 }
 0x127   :  { %492 = vmin.xlane.f32.xlu0 %v2595_v17 }
 0x12b   :  { %494 = vmin.xlane.f32.xlu0 %v2599_v18 }
 0x158   :  { %v453_v23 = vpop.xlane.xlu0 %452 }
 0x159   :  { %vm515_vm1 = vcmp.eq.f32.partialorder %v2475_v41, %v453_v23 }
 0x15a   :  { %v2607_v24 = vsel %vm515_vm1, %v2603_v21, 128 }
 0x15b   :  { %v593_v25 = vshra.s32 %v2607_v24, 16 }
 0x15c   :  { %v451_v26 = vpop.xlane.xlu0 %450  ;;  %v457_v27 = vpop.xlane.xlu1 %456 }
 0x15d   :  { %vm514_vm2 = vcmp.eq.f32.partialorder %v2479_v46, %v451_v26  ;;  %vm517_vm3 = vcmp.eq.f32.partialorder %v2482_v47, %v457_v27  ;;  %v2612_v37 = vcvt.s32.f32 %v593_v25 }
 0x15e   :  { %v2615_v28 = vsel %vm514_vm2, %v2603_v21, 128  ;;  %v2618_v29 = vsel %vm517_vm3, %v2603_v21, 128 }
 0x15f   :  { %596 = vmin.xlane.f32.xlu1 %v2612_v37  ;;  %v621_v41 = vshra.s32 %v2618_v29, 16  ;;  %v579_v30 = vshra.s32 %v2615_v28, 16 }
 0x160   :  { %v455_v31 = vpop.xlane.xlu1 %454 }
 0x161   :  { %vm516_vm4 = vcmp.eq.f32.partialorder %v2487_v52, %v455_v31  ;;  %v2624_v46 = vcvt.s32.f32 %v621_v41  ;;  %v2626_v47 = vcvt.s32.f32 %v579_v30 }
 0x162   :  { %v2629_v32 = vsel %vm516_vm4, %v2603_v21, 128  ;;  %v459_v33 = vpop.xlane.xlu0 %458 }
 0x163   :  { %vm518_vm5 = vcmp.eq.f32.partialorder %v2491_v54, %v459_v33  ;;  %624 = vmin.xlane.f32.xlu1 %v2624_v46  ;;  %582 = vmin.xlane.f32.xlu0 %v2626_v47  ;;  %v607_v34 = vshra.s32 %v2629_v32, 16 }
 0x164   :  { %v2636_v36 = vsel %vm518_vm5, %v2603_v21, 128  ;;  %v461_v52 = vpop.xlane.xlu1 %460 }
 0x165   :  { %vm519_vm6 = vcmp.eq.f32.partialorder %v2495_v58, %v461_v52  ;;  %v2639_v38 = vcvt.s32.f32 %v607_v34  ;;  %v635_v39 = vshra.s32 %v2636_v36, 16 }
 0x166   :  { %v2643_v42 = vsel %vm519_vm6, %v2603_v21, 128  ;;  %v463_v54 = vpop.xlane.xlu0 %462 }
 0x167   :  { %vm520_vm7 = vcmp.eq.f32.partialorder %v2499_v60, %v463_v54  ;;  %610 = vmin.xlane.f32.xlu0 %v2639_v38  ;;  %v649_v43 = vshra.s32 %v2643_v42, 16  ;;  %v2654_v51 = vcvt.s32.f32 %v635_v39 }
 0x168   :  { %v2649_v45 = vsel %vm520_vm7, %v2603_v21, 128  ;;  %v465_v49 = vpop.xlane.xlu1 %464 }
 0x169   :  { %vm521_vm8 = vcmp.eq.f32.partialorder %v2503_v0, %v465_v49  ;;  %v2652_v58 = vcvt.s32.f32 %v649_v43  ;;  %v663_v55 = vshra.s32 %v2649_v45, 16 }
 0x16a   :  { %v2658_v57 = vsel %vm521_vm8, %v2603_v21, 128  ;;  %v467_v60 = vpop.xlane.xlu0 %466 }
 0x16b   :  { %vm522_vm9 = vcmp.eq.f32.partialorder %v2507_v2, %v467_v60  ;;  %652 = vmin.xlane.f32.xlu1 %v2652_v58  ;;  %638 = vmin.xlane.f32.xlu0 %v2654_v51  ;;  %v677_v61 = vshra.s32 %v2658_v57, 16  ;;  %v2670_v5 = vcvt.s32.f32 %v663_v55 }
 0x16c   :  { %v2665_v0 = vsel %vm522_vm9, %v2603_v21, 128  ;;  %v469_v63 = vpop.xlane.xlu1 %468 }
 0x16d   :  { %vm523_vm10 = vcmp.eq.f32.partialorder %v2511_v6, %v469_v63  ;;  %v2668_v3 = vcvt.s32.f32 %v677_v61  ;;  %v691_v9 = vshra.s32 %v2665_v0, 16 }
 0x16e   :  { %v2674_v2 = vsel %vm523_vm10, %v2603_v21, 128  ;;  %v471_v13 = vpop.xlane.xlu0 %470 }
 0x16f   :  { %vm524_vm11 = vcmp.eq.f32.partialorder %v2515_v8, %v471_v13  ;;  %680 = vmin.xlane.f32.xlu1 %v2668_v3  ;;  %666 = vmin.xlane.f32.xlu0 %v2670_v5  ;;  %v705_v16 = vshra.s32 %v2674_v2, 16  ;;  %v2686_v26 = vcvt.s32.f32 %v691_v9 }
 0x170   :  { %v2681_v6 = vsel %vm524_vm11, %v2603_v21, 128  ;;  %v473_v23 = vpop.xlane.xlu1 %472 }
 0x171   :  { %vm525_vm12 = vcmp.eq.f32.partialorder %v2519_v11, %v473_v23  ;;  %v2684_v25 = vcvt.s32.f32 %v705_v16  ;;  %v719_v27 = vshra.s32 %v2681_v6, 16 }
 0x172   :  { %v2690_v8 = vsel %vm525_vm12, %v2603_v21, 128 }
 0x173   :  { %708 = vmin.xlane.f32.xlu1 %v2684_v25  ;;  %694 = vmin.xlane.f32.xlu0 %v2686_v26  ;;  %v733_v41 = vshra.s32 %v2690_v8, 16  ;;  %v2698_v11 = vcvt.s32.f32 %v719_v27 }
 0x174   :  { %v477_v30 = vpop.xlane.xlu1 %476 }
 0x175   :  { %vm527_vm13 = vcmp.eq.f32.partialorder %v2523_v15, %v477_v30  ;;  %v2696_v31 = vcvt.s32.f32 %v733_v41 }
 0x176   :  { %v2701_v33 = vsel %vm527_vm13, %v2603_v21, 128 }
 0x177   :  { %736 = vmin.xlane.f32.xlu1 %v2696_v31  ;;  %722 = vmin.xlane.f32.xlu0 %v2698_v11  ;;  %v761_v34 = vshra.s32 %v2701_v33, 16 }
 0x178   :  { %v481_v52 = vpop.xlane.xlu1 %480 }
 0x179   :  { %vm529_vm14 = vcmp.eq.f32.partialorder %v2527_v19, %v481_v52  ;;  %v2707_v39 = vcvt.s32.f32 %v761_v34 }
 0x17a   :  { %v2710_v15 = vsel %vm529_vm14, %v2603_v21, 128 }
 0x17b   :  { %764 = vmin.xlane.f32.xlu1 %v2707_v39  ;;  %v789_v54 = vshra.s32 %v2710_v15, 16 }
 0x17c   :  { %v479_v43 = vpop.xlane.xlu1 %478 }
 0x17d   :  { %vm528_vm15 = vcmp.eq.f32.partialorder %v2531_v22, %v479_v43  ;;  %v2715_v49 = vcvt.s32.f32 %v789_v54 }
 0x17e   :  { %v2718_v55 = vsel %vm528_vm15, %v2603_v21, 128 }
 0x17f   :  { %792 = vmin.xlane.f32.xlu1 %v2715_v49  ;;  %v775_v19 = vshra.s32 %v2718_v55, 16 }
 0x181   :  { %v2722_v60 = vcvt.s32.f32 %v775_v19 }
 0x183   :  { %778 = vmin.xlane.f32.xlu1 %v2722_v60 }
 0x190   :  { %v509_v61 = vpop.xlane.xlu0 %508 }
 0x191   :  { %vm543_vm1 = vcmp.eq.f32.partialorder %v2535_v35, %v509_v61 }
 0x192   :  { %v2727_v63 = vsel %vm543_vm1, %v2603_v21, 128  ;;  %v507_v22 = vpop.xlane.xlu1 %506 }
 0x193   :  { %vm542_vm2 = vcmp.eq.f32.partialorder %v2539_v40, %v507_v22  ;;  %v985_v9 = vshra.s32 %v2727_v63, 16 }
 0x194   :  { %v2732_v13 = vsel %vm542_vm2, %v2603_v21, 128  ;;  %v513_v16 = vpop.xlane.xlu0 %512 }
 0x195   :  { %vm545_vm3 = vcmp.eq.f32.partialorder %v2543_v44, %v513_v16  ;;  %v2735_v23 = vcvt.s32.f32 %v985_v9  ;;  %v971_v27 = vshra.s32 %v2732_v13, 16 }
 0x196   :  { %v2739_v35 = vsel %vm545_vm3, %v2603_v21, 128  ;;  %v483_v41 = vpop.xlane.xlu1 %482 }
 0x197   :  { %vm530_vm4 = vcmp.eq.f32.partialorder %v2547_v48, %v483_v41  ;;  %988 = vmin.xlane.f32.xlu0 %v2735_v23  ;;  %v2743_v40 = vcvt.s32.f32 %v971_v27  ;;  %v1013_v30 = vshra.s32 %v2739_v35, 16 }
 0x198   :  { %v2747_v34 = vsel %vm530_vm4, %v2603_v21, 128  ;;  %v511_v44 = vpop.xlane.xlu0 %510 }
 0x199   :  { %vm544_vm5 = vcmp.eq.f32.partialorder %v2551_v50, %v511_v44  ;;  %974 = vmin.xlane.f32.xlu1 %v2743_v40  ;;  %v2751_v52 = vcvt.s32.f32 %v1013_v30  ;;  %v803_v54 = vshra.s32 %v2747_v34, 16 }
 0x19a   :  { %v2755_v48 = vsel %vm544_vm5, %v2603_v21, 128  ;;  %v503_v43 = vpop.xlane.xlu1 %502 }
 0x19b   :  { %vm540_vm6 = vcmp.eq.f32.partialorder %v2555_v53, %v503_v43  ;;  %1016 = vmin.xlane.f32.xlu0 %v2751_v52  ;;  %v2759_v19 = vcvt.s32.f32 %v803_v54  ;;  %v999_v61 = vshra.s32 %v2755_v48, 16 }
 0x19c   :  { %v2763_v50 = vsel %vm540_vm6, %v2603_v21, 128  ;;  %v475_v22 = vpop.xlane.xlu0 %474 }
 0x19d   :  { %vm526_vm7 = vcmp.eq.f32.partialorder %v2559_v56, %v475_v22  ;;  %806 = vmin.xlane.f32.xlu1 %v2759_v19  ;;  %v2767_v9 = vcvt.s32.f32 %v999_v61  ;;  %v943_v16 = vshra.s32 %v2763_v50, 16 }
 0x19e   :  { %v2771_v53 = vsel %vm526_vm7, %v2603_v21, 128  ;;  %v489_v27 = vpop.xlane.xlu1 %488 }
 0x19f   :  { %vm533_vm8 = vcmp.eq.f32.partialorder %v2563_v59, %v489_v27  ;;  %1002 = vmin.xlane.f32.xlu0 %v2767_v9  ;;  %v2775_v41 = vcvt.s32.f32 %v943_v16  ;;  %v747_v30 = vshra.s32 %v2771_v53, 16 }
 0x1a0   :  { %v2779_v56 = vsel %vm533_vm8, %v2603_v21, 128  ;;  %v505_v44 = vpop.xlane.xlu0 %504 }
 0x1a1   :  { %vm541_vm9 = vcmp.eq.f32.partialorder %v2567_v62, %v505_v44  ;;  %946 = vmin.xlane.f32.xlu1 %v2775_v41  ;;  %v2783_v54 = vcvt.s32.f32 %v747_v30  ;;  %v845_v43 = vshra.s32 %v2779_v56, 16 }
 0x1a2   :  { %v2787_v59 = vsel %vm541_vm9, %v2603_v21, 128  ;;  %v491_v61 = vpop.xlane.xlu1 %490 }
 0x1a3   :  { %vm534_vm10 = vcmp.eq.f32.partialorder %v2571_v1, %v491_v61  ;;  %750 = vmin.xlane.f32.xlu0 %v2783_v54  ;;  %v2791_v22 = vcvt.s32.f32 %v845_v43  ;;  %v957_v16 = vshra.s32 %v2787_v59, 16 }
 0x1a4   :  { %v2795_v62 = vsel %vm534_vm10, %v2603_v21, 128  ;;  %v485_v27 = vpop.xlane.xlu0 %484 }
 0x1a5   :  { %3848 = vst [vmem:[#allocation9_spill] sm:$0xff] %v2791_v22  ;;  %vm531_vm11 = vcmp.eq.f32.partialorder %v2575_v4, %v485_v27  ;;  %848 = vmin.xlane.f32.xlu1 %v2791_v22  ;;  %v2799_v30 = vcvt.s32.f32 %v957_v16  ;;  %v859_v44 = vshra.s32 %v2795_v62, 16 }
 0x1a6   :  { %v2803_v1 = vsel %vm531_vm11, %v2603_v21, 128  ;;  %v499_v61 = vpop.xlane.xlu1 %498 }
 0x1a7   :  { %3849 = vst [vmem:[#allocation10_spill] sm:$0xff] %v2799_v30  ;;  %vm538_vm12 = vcmp.eq.f32.partialorder %v2579_v7, %v499_v61  ;;  %960 = vmin.xlane.f32.xlu0 %v2799_v30  ;;  %v2807_v43 = vcvt.s32.f32 %v859_v44  ;;  %v817_v20 = vshra.s32 %v2803_v1, 16 }
 0x1a8   :  { %v2811_v4 = vsel %vm538_vm12, %v2603_v21, 128  ;;  %v487_v27 = vpop.xlane.xlu0 %486 }
 0x1a9   :  { %3850 = vst [vmem:[#allocation11_spill] sm:$0xff] %v2807_v43  ;;  %vm532_vm13 = vcmp.eq.f32.partialorder %v2583_v10, %v487_v27  ;;  %862 = vmin.xlane.f32.xlu1 %v2807_v43  ;;  %v2815_v16 = vcvt.s32.f32 %v817_v20  ;;  %v915_v22 = vshra.s32 %v2811_v4, 16 }
 0x1aa   :  { %v2819_v7 = vsel %vm532_vm13, %v2603_v21, 128  ;;  %v497_v61 = vpop.xlane.xlu1 %496 }
 0x1ab   :  { %3851 = vst [vmem:[#allocation12_spill] sm:$0xff] %v2815_v16  ;;  %vm537_vm14 = vcmp.eq.f32.partialorder %v2587_v12, %v497_v61  ;;  %820 = vmin.xlane.f32.xlu0 %v2815_v16  ;;  %v2823_v44 = vcvt.s32.f32 %v915_v22  ;;  %v831_v30 = vshra.s32 %v2819_v7, 16 }
 0x1ac   :  { %v2827_v10 = vsel %vm537_vm14, %v2603_v21, 128  ;;  %v501_v27 = vpop.xlane.xlu0 %500 }
 0x1ad   :  { %3852 = vst [vmem:[#allocation13_spill] sm:$0xff] %v2823_v44  ;;  %vm539_vm15 = vcmp.eq.f32.partialorder %v2591_v14, %v501_v27  ;;  %918 = vmin.xlane.f32.xlu1 %v2823_v44  ;;  %v2831_v20 = vcvt.s32.f32 %v831_v30  ;;  %v901_v43 = vshra.s32 %v2827_v10, 16 }
 0x1ae   :  { %v2835_v12 = vsel %vm539_vm15, %v2603_v21, 128 }
 0x1af   :  { %3853 = vst [vmem:[#allocation14_spill] sm:$0xff] %v2831_v20  ;;  %834 = vmin.xlane.f32.xlu0 %v2831_v20  ;;  %v2838_v22 = vcvt.s32.f32 %v901_v43  ;;  %v929_v61 = vshra.s32 %v2835_v12, 16 }
 0x1b0   :  { %v493_v16 = vpop.xlane.xlu0 %492 }
 0x1b1   :  { %vm535_vm1 = vcmp.eq.f32.partialorder %v2595_v17, %v493_v16  ;;  %904 = vmin.xlane.f32.xlu1 %v2838_v22  ;;  %v2843_v14 = vcvt.s32.f32 %v929_v61  ;;  %v592_v61 = vand.u32 65535, %v2607_v24 }
 0x1b2   :  { %v2846_v30 = vsel %vm535_vm1, %v2603_v21, 128 }
 0x1b3   :  { %3854 = vst [vmem:[#allocation15_spill] sm:$0xff] %v2843_v14  ;;  %3855 = vst [vmem:[#allocation16_spill] sm:$0xff] %v2846_v30  ;;  %932 = vmin.xlane.f32.xlu0 %v2843_v14  ;;  %v873_v27 = vshra.s32 %v2846_v30, 16  ;;  %v578_v14 = vand.u32 65535, %v2615_v28  ;;  %v620_v30 = vand.u32 65535, %v2618_v29 }
 0x1b4   :  { %v495_v44 = vpop.xlane.xlu0 %494 }
 0x1b5   :  { %vm536_vm2 = vcmp.eq.f32.partialorder %v2599_v18, %v495_v44  ;;  %v2851_v43 = vcvt.s32.f32 %v873_v27  ;;  %v594_v44 = vcvt.s32.f32 %v592_v61  ;;  %v580_v24 = vcvt.s32.f32 %v578_v14 }
 0x1b6   :  { %v2854_v20 = vsel %vm536_vm2, %v2603_v21, 128  ;;  %v606_v21 = vand.u32 65535, %v2629_v32  ;;  %v648_v32 = vand.u32 65535, %v2643_v42  ;;  %v690_v42 = vand.u32 65535, %v2665_v0 }
 0x1b7   :  { %3856 = vst [vmem:[#allocation17_spill] sm:$0xff] %v2851_v43  ;;  %876 = vmin.xlane.f32.xlu0 %v2851_v43  ;;  %v887_v17 = vshra.s32 %v2854_v20, 16  ;;  %v718_v0 = vand.u32 65535, %v2681_v6  ;;  %v760_v6 = vand.u32 65535, %v2701_v33 }
 0x1b9   :  { %v2858_v16 = vcvt.s32.f32 %v887_v17  ;;  %v762_v33 = vcvt.s32.f32 %v760_v6 }
 0x1bb   :  { %3857 = vst [vmem:[#allocation18_spill] sm:$0xff] %v2858_v16  ;;  %890 = vmin.xlane.f32.xlu0 %v2858_v16  ;;  %v622_v16 = vcvt.s32.f32 %v620_v30 }
 0x1e8   :  { %v2864_v18 = vpop.xlane.xlu1 %596 }
 0x1e9   :  { %vm598_vm3 = vcmp.eq.f32.partialorder %v2612_v37, %v2864_v18  ;;  %v634_v37 = vand.u32 65535, %v2636_v36 }
 0x1ea   :  { %v599_v27 = vsel %vm598_vm3, %v594_v44, inf  ;;  %v608_v44 = vcvt.s32.f32 %v606_v21 }
 0x1eb   :  { %600 = vmin.xlane.f32.xlu1 %v599_v27  ;;  %v650_v27 = vcvt.s32.f32 %v648_v32  ;;  %v636_v36 = vcvt.s32.f32 %v634_v37 }
 0x1ec   :  { %v2869_v17 = vpop.xlane.xlu1 %624  ;;  %v2871_v43 = vpop.xlane.xlu0 %582 }
 0x1ed   :  { %vm626_vm4 = vcmp.eq.f32.partialorder %v2624_v46, %v2869_v17  ;;  %vm584_vm5 = vcmp.eq.f32.partialorder %v2626_v47, %v2871_v43  ;;  %v662_v46 = vand.u32 65535, %v2649_v45  ;;  %v676_v47 = vand.u32 65535, %v2658_v57 }
 0x1ee   :  { %v627_v28 = vsel %vm626_vm4, %v622_v16, inf  ;;  %v585_v29 = vsel %vm584_vm5, %v580_v24, inf  ;;  %v704_v45 = vand.u32 65535, %v2674_v2  ;;  %v732_v2 = vand.u32 65535, %v2690_v8 }
 0x1ef   :  { %628 = vmin.xlane.f32.xlu1 %v627_v28  ;;  %586 = vmin.xlane.f32.xlu0 %v585_v29  ;;  %v678_v28 = vcvt.s32.f32 %v676_v47  ;;  %v664_v29 = vcvt.s32.f32 %v662_v46 }
 0x1f0   :  { %v2879_v61 = vpop.xlane.xlu0 %610  ;;  %v734_v47 = vcvt.s32.f32 %v732_v2 }
 0x1f1   :  { %vm612_vm6 = vcmp.eq.f32.partialorder %v2639_v38, %v2879_v61 }
 0x1f2   :  { %v613_v14 = vsel %vm612_vm6, %v608_v44, inf  ;;  %v706_v44 = vcvt.s32.f32 %v704_v45 }
 0x1f3   :  { %614 = vmin.xlane.f32.xlu0 %v613_v14  ;;  %v692_v14 = vcvt.s32.f32 %v690_v42  ;;  %v774_v42 = vand.u32 65535, %v2718_v55  ;;  %v970_v55 = vand.u32 65535, %v2732_v13 }
 0x1f4   :  { %v2885_v30 = vpop.xlane.xlu1 %652  ;;  %v2887_v16 = vpop.xlane.xlu0 %638 }
 0x1f5   :  { %vm654_vm7 = vcmp.eq.f32.partialorder %v2652_v58, %v2885_v30  ;;  %vm640_vm8 = vcmp.eq.f32.partialorder %v2654_v51, %v2887_v16 }
 0x1f6   :  { %v655_v21 = vsel %vm654_vm7, %v650_v27, inf  ;;  %v641_v38 = vsel %vm640_vm8, %v636_v36, inf  ;;  %v720_v27 = vcvt.s32.f32 %v718_v0  ;;  %v788_v36 = vand.u32 65535, %v2710_v15 }
 0x1f7   :  { %656 = vmin.xlane.f32.xlu1 %v655_v21  ;;  %642 = vmin.xlane.f32.xlu0 %v641_v38  ;;  %v776_v15 = vcvt.s32.f32 %v774_v42  ;;  %v3858_v42 = vld [vmem:[#allocation9_spill] sm:$0xff] }
 0x1f8   :  { %v2895_v57 = vpop.xlane.xlu1 %680  ;;  %v2897_v24 = vpop.xlane.xlu0 %666  ;;  %v790_v45 = vcvt.s32.f32 %v788_v36 }
 0x1f9   :  { %vm682_vm9 = vcmp.eq.f32.partialorder %v2668_v3, %v2895_v57  ;;  %vm668_vm10 = vcmp.eq.f32.partialorder %v2670_v5, %v2897_v24 }
 0x1fa   :  { %v683_v58 = vsel %vm682_vm9, %v678_v28, inf  ;;  %v669_v51 = vsel %vm668_vm10, %v664_v29, inf }
 0x1fb   :  { %684 = vmin.xlane.f32.xlu1 %v683_v58  ;;  %670 = vmin.xlane.f32.xlu0 %v669_v51  ;;  %v1012_v58 = vand.u32 65535, %v2739_v35 }
 0x1fc   :  { %v2905_v37 = vpop.xlane.xlu1 %708  ;;  %v2907_v32 = vpop.xlane.xlu0 %694 }
 0x1fd   :  { %vm710_vm11 = vcmp.eq.f32.partialorder %v2684_v25, %v2905_v37  ;;  %vm696_vm12 = vcmp.eq.f32.partialorder %v2686_v26, %v2907_v32 }
 0x1fe   :  { %v711_v3 = vsel %vm710_vm11, %v706_v44, inf  ;;  %v697_v5 = vsel %vm696_vm12, %v692_v14, inf  ;;  %v1014_v14 = vcvt.s32.f32 %v1012_v58 }
 0x1ff   :  { %712 = vmin.xlane.f32.xlu1 %v711_v3  ;;  %698 = vmin.xlane.f32.xlu0 %v697_v5 }
 0x200   :  { %v2914_v46 = vpop.xlane.xlu1 %736  ;;  %v2916_v8 = vpop.xlane.xlu0 %722 }
 0x201   :  { %vm738_vm13 = vcmp.eq.f32.partialorder %v2696_v31, %v2914_v46  ;;  %vm724_vm14 = vcmp.eq.f32.partialorder %v2698_v11, %v2916_v8 }
 0x202   :  { %v739_v25 = vsel %vm738_vm13, %v734_v47, inf  ;;  %v725_v26 = vsel %vm724_vm14, %v720_v27, inf }
 0x203   :  { %740 = vmin.xlane.f32.xlu1 %v739_v25  ;;  %726 = vmin.xlane.f32.xlu0 %v725_v26 }
 0x204   :  { %v2923_v21 = vpop.xlane.xlu1 %764 }
 0x205   :  { %vm766_vm15 = vcmp.eq.f32.partialorder %v2707_v39, %v2923_v21  ;;  %v984_v39 = vand.u32 65535, %v2727_v63  ;;  %v998_v63 = vand.u32 65535, %v2755_v48 }
 0x206   :  { %v767_v38 = vsel %vm766_vm15, %v762_v33, inf }
 0x207   :  { %768 = vmin.xlane.f32.xlu1 %v767_v38  ;;  %v986_v0 = vcvt.s32.f32 %v984_v39  ;;  %v1000_v47 = vcvt.s32.f32 %v998_v63 }
 0x208   :  { %v2928_v31 = vpop.xlane.xlu1 %792 }
 0x209   :  { %vm794_vm1 = vcmp.eq.f32.partialorder %v2715_v49, %v2928_v31  ;;  %v802_v49 = vand.u32 65535, %v2747_v34 }
 0x20a   :  { %v795_v11 = vsel %vm794_vm1, %v790_v45, inf }
 0x20b   :  { %796 = vmin.xlane.f32.xlu1 %v795_v11  ;;  %v804_v5 = vcvt.s32.f32 %v802_v49 }
 0x20c   :  { %v2932_v28 = vpop.xlane.xlu1 %778 }
 0x20d   :  { %vm780_vm2 = vcmp.eq.f32.partialorder %v2722_v60, %v2932_v28  ;;  %v972_v60 = vcvt.s32.f32 %v970_v55  ;;  %v3860_v55 = vld [vmem:[#allocation11_spill] sm:$0xff] }
 0x20e   :  { %v781_v29 = vsel %vm780_vm2, %v776_v15, inf  ;;  %v3859_v15 = vld [vmem:[#allocation10_spill] sm:$0xff] }
 0x20f   :  { %782 = vmin.xlane.f32.xlu1 %v781_v29 }
 0x220   :  { %v2939_v51 = vpop.xlane.xlu0 %988 }
 0x221   :  { %vm990_vm3 = vcmp.eq.f32.partialorder %v2735_v23, %v2939_v51  ;;  %v942_v23 = vand.u32 65535, %v2763_v50 }
 0x222   :  { %v2944_v2 = vpop.xlane.xlu1 %974  ;;  %v991_v44 = vsel %vm990_vm3, %v986_v0, inf }
 0x223   :  { %992 = vmin.xlane.f32.xlu0 %v991_v44  ;;  %vm976_vm4 = vcmp.eq.f32.partialorder %v2743_v40, %v2944_v2  ;;  %v746_v40 = vand.u32 65535, %v2771_v53  ;;  %v944_v25 = vcvt.s32.f32 %v942_v23  ;;  %v3861_v44 = vld [vmem:[#allocation12_spill] sm:$0xff] }
 0x224   :  { %v2949_v13 = vpop.xlane.xlu0 %1016  ;;  %v977_v35 = vsel %vm976_vm4, %v972_v60, inf }
 0x225   :  { %978 = vmin.xlane.f32.xlu1 %v977_v35  ;;  %vm1018_vm5 = vcmp.eq.f32.partialorder %v2751_v52, %v2949_v13  ;;  %v844_v52 = vand.u32 65535, %v2779_v56  ;;  %v748_v36 = vcvt.s32.f32 %v746_v40  ;;  %v3863_v40 = vld [vmem:[#allocation14_spill] sm:$0xff] }
 0x226   :  { %v2954_v34 = vpop.xlane.xlu1 %806  ;;  %v1019_v3 = vsel %vm1018_vm5, %v1014_v14, inf  ;;  %v3862_v14 = vld [vmem:[#allocation13_spill] sm:$0xff] }
 0x227   :  { %1020 = vmin.xlane.f32.xlu0 %v1019_v3  ;;  %vm808_vm6 = vcmp.eq.f32.partialorder %v2759_v19, %v2954_v34  ;;  %v956_v19 = vand.u32 65535, %v2787_v59  ;;  %v846_v38 = vcvt.s32.f32 %v844_v52  ;;  %v3864_v52 = vld [vmem:[#allocation16_spill] sm:$0xff] }
 0x228   :  { %v2959_v48 = vpop.xlane.xlu0 %1002  ;;  %v809_v6 = vsel %vm808_vm6, %v804_v5, inf }
 0x229   :  { %810 = vmin.xlane.f32.xlu1 %v809_v6  ;;  %vm1004_vm7 = vcmp.eq.f32.partialorder %v2767_v9, %v2959_v48  ;;  %v858_v9 = vand.u32 65535, %v2795_v62  ;;  %v958_v11 = vcvt.s32.f32 %v956_v19 }
 0x22a   :  { %v2964_v50 = vpop.xlane.xlu1 %946  ;;  %v1005_v27 = vsel %vm1004_vm7, %v1000_v47, inf }
 0x22b   :  { %1006 = vmin.xlane.f32.xlu0 %v1005_v27  ;;  %vm948_vm8 = vcmp.eq.f32.partialorder %v2775_v41, %v2964_v50  ;;  %v816_v41 = vand.u32 65535, %v2803_v1  ;;  %v860_v39 = vcvt.s32.f32 %v858_v9  ;;  %v830_v1 = vand.u32 65535, %v2819_v7 }
 0x22c   :  { %v2969_v53 = vpop.xlane.xlu0 %750  ;;  %v949_v26 = vsel %vm948_vm8, %v944_v25, inf  ;;  %v928_v7 = vand.u32 65535, %v2835_v12  ;;  %v872_v27 = vand.u32 65535, %v3864_v52  ;;  %v886_v9 = vand.u32 65535, %v2854_v20 }
 0x22d   :  { %950 = vmin.xlane.f32.xlu1 %v949_v26  ;;  %vm752_vm9 = vcmp.eq.f32.partialorder %v2783_v54, %v2969_v53  ;;  %v914_v54 = vand.u32 65535, %v2811_v4  ;;  %v818_v49 = vcvt.s32.f32 %v816_v41  ;;  %v900_v4 = vand.u32 65535, %v2827_v10  ;;  %v3865_v26 = vld [vmem:[#allocation15_spill] sm:$0xff] }
 0x22e   :  { %v2974_v56 = vpop.xlane.xlu1 %848  ;;  %v753_v33 = vsel %vm752_vm9, %v748_v36, inf  ;;  %v832_v5 = vcvt.s32.f32 %v830_v1  ;;  %v930_v19 = vcvt.s32.f32 %v928_v7  ;;  %v603_v20 = vcvt.f32.s32 %v2864_v18 }
 0x22f   :  { %754 = vmin.xlane.f32.xlu0 %v753_v33  ;;  %vm850_vm10 = vcmp.eq.f32.partialorder %v3858_v42, %v2974_v56  ;;  %v916_v35 = vcvt.s32.f32 %v914_v54  ;;  %v902_v47 = vcvt.s32.f32 %v900_v4  ;;  %v3866_v42 = vld [vmem:[#allocation17_spill] sm:$0xff]  ;;  %v3868_v54 = vld [vmem:[#allocation8_spill] sm:$0xff] }
 0x230   :  { %v2979_v59 = vpop.xlane.xlu0 %960  ;;  %v851_v45 = vsel %vm850_vm10, %v846_v38, inf  ;;  %v874_v38 = vcvt.s32.f32 %v872_v27  ;;  %v687_v27 = vcvt.f32.s32 %v2895_v57 }
 0x231   :  { %852 = vmin.xlane.f32.xlu1 %v851_v45  ;;  %vm962_vm11 = vcmp.eq.f32.partialorder %v3859_v15, %v2979_v59  ;;  %v888_v45 = vcvt.s32.f32 %v886_v9 }
 0x232   :  { %v2984_v62 = vpop.xlane.xlu1 %862  ;;  %v963_v29 = vsel %vm962_vm11, %v958_v11, inf  ;;  %v3867_v11 = vld [vmem:[#allocation18_spill] sm:$0xff] }
 0x233   :  { %964 = vmin.xlane.f32.xlu0 %v963_v29  ;;  %vm864_vm12 = vcmp.eq.f32.partialorder %v3860_v55, %v2984_v62  ;;  %v1379_v29 = vcvt.s32.f32 %v3868_v54  ;;  %v589_v55 = vcvt.f32.s32 %v2871_v43  ;;  %v659_v43 = vcvt.f32.s32 %v2885_v30 }
 0x234   :  { %v2989_v58 = vpop.xlane.xlu0 %820  ;;  %v865_v0 = vsel %vm864_vm12, %v860_v39, inf }
 0x235   :  { %866 = vmin.xlane.f32.xlu1 %v865_v0  ;;  %vm822_vm13 = vcmp.eq.f32.partialorder %v3861_v44, %v2989_v58  ;;  %2097 = vmatprep.mubr.f32.mxu0 %v1379_v29  ;;  %v604_v0 = vshll.u32 %v603_v20, 16 }
 0x236   :  { %v2994_v60 = vpop.xlane.xlu1 %918  ;;  %v823_v63 = vsel %vm822_vm13, %v818_v49, inf  ;;  %v631_v49 = vcvt.f32.s32 %v2869_v17 }
 0x237   :  { %824 = vmin.xlane.f32.xlu0 %v823_v63  ;;  %vm920_vm14 = vcmp.eq.f32.partialorder %v3862_v14, %v2994_v60  ;;  %v590_v63 = vshll.u32 %v589_v55, 16 }
 0x238   :  { %v2999_v23 = vpop.xlane.xlu0 %834  ;;  %v921_v3 = vsel %vm920_vm14, %v916_v35, inf  ;;  %v617_v35 = vcvt.f32.s32 %v2879_v61  ;;  %v2295_v61 = vmov 1.0  }
 0x239   :  { %922 = vmin.xlane.f32.xlu1 %v921_v3  ;;  %vm836_vm15 = vcmp.eq.f32.partialorder %v3863_v40, %v2999_v23 }
 0x23a   :  { %v3003_v6 = vpop.xlane.xlu1 %904  ;;  %v837_v10 = vsel %vm836_vm15, %v832_v5, inf  ;;  %v632_v5 = vshll.u32 %v631_v49, 16  ;;  %v743_v49 = vcvt.f32.s32 %v2914_v46 }
 0x23b   :  { %838 = vmin.xlane.f32.xlu0 %v837_v10  ;;  %vm906_vm1 = vcmp.eq.f32.partialorder %v2838_v22, %v3003_v6  ;;  %v618_v10 = vshll.u32 %v617_v35, 16 }
 0x23c   :  { %v3008_v25 = vpop.xlane.xlu0 %932  ;;  %v907_v12 = vsel %vm906_vm1, %v902_v47, inf  ;;  %v645_v47 = vcvt.f32.s32 %v2887_v16  ;;  %v660_v16 = vshll.u32 %v659_v43, 16 }
 0x23d   :  { %908 = vmin.xlane.f32.xlu1 %v907_v12  ;;  %vm934_vm2 = vcmp.eq.f32.partialorder %v3865_v26, %v3008_v25  ;;  %v673_v12 = vcvt.f32.s32 %v2897_v24  ;;  %v688_v24 = vshll.u32 %v687_v27, 16 }
 0x23e   :  { %v935_v36 = vsel %vm934_vm2, %v930_v19, inf }
 0x23f   :  { %936 = vmin.xlane.f32.xlu0 %v935_v36  ;;  %v646_v36 = vshll.u32 %v645_v47, 16 }
 0x240   :  { %v3013_v33 = vpop.xlane.xlu0 %876 }
 0x241   :  { %vm878_vm3 = vcmp.eq.f32.partialorder %v3866_v42, %v3013_v33 }
 0x242   :  { %v879_v22 = vsel %vm878_vm3, %v874_v38, inf }
 0x243   :  { %880 = vmin.xlane.f32.xlu0 %v879_v22  ;;  %v674_v22 = vshll.u32 %v673_v12, 16 }
 0x244   :  { %v3017_v41 = vpop.xlane.xlu0 %890 }
 0x245   :  { %vm892_vm4 = vcmp.eq.f32.partialorder %v3867_v11, %v3017_v41  ;;  %v701_v11 = vcvt.f32.s32 %v2907_v32 }
 0x246   :  { %v893_v15 = vsel %vm892_vm4, %v888_v45, inf  ;;  %v715_v45 = vcvt.f32.s32 %v2905_v37 }
 0x247   :  { %894 = vmin.xlane.f32.xlu0 %v893_v15 }
 0x248   :  { %v716_v32 = vshll.u32 %v715_v45, 16  ;;  %v785_v45 = vcvt.f32.s32 %v2932_v28  ;;  %v981_v28 = vcvt.f32.s32 %v2944_v2 }
 0x274   :  { %v601_v39 = vpop.xlane.xlu1 %600 }
 0x275   :  { %v602_v1 = vcvt.f32.s32 %v601_v39 }
 0x277   :  { %v3028_v7 = vadd.s32 %v604_v0, %v602_v1  ;;  %v702_v0 = vshll.u32 %v701_v11, 16  ;;  %v995_v11 = vcvt.f32.s32 %v2939_v51 }
 0x278   :  { %v629_v44 = vpop.xlane.xlu1 %628  ;;  %v587_v4 = vpop.xlane.xlu0 %586 }
 0x279   :  { %v588_v14 = vcvt.f32.s32 %v587_v4  ;;  %v630_v3 = vcvt.f32.s32 %v629_v44  ;;  %vm3839_vm6 = vcmp.eq.s32.totalorder %v3868_v54, %v3028_v7  ;;  %v729_v44 = vcvt.f32.s32 %v2916_v8 }
 0x27a   :  { %v744_v8 = vshll.u32 %v743_v49, 16 }
 0x27b   :  { %v3030_v18 = vadd.s32 %v590_v63, %v588_v14  ;;  %v3036_v17 = vadd.s32 %v632_v5, %v630_v3  ;;  %v730_v5 = vshll.u32 %v729_v44, 16 }
 0x27c   :  { %v615_v40 = vpop.xlane.xlu0 %614 }
 0x27d   :  { %v616_v52 = vcvt.f32.s32 %v615_v40  ;;  %vm3838_vm5 = vcmp.eq.s32.totalorder %v3868_v54, %v3030_v18  ;;  %vm3841_vm8 = vcmp.eq.s32.totalorder %v3868_v54, %v3036_v17 }
 0x27e   :  { %2163 = vmatprep.mubr.msk.f32.mxu1 %vm3838_vm5, %v2295_v61 }
 0x27f   :  { %v3044_v30 = vadd.s32 %v618_v10, %v616_v52  ;;  %2164 = vmatmul.mubr.msk.f32.vlgmr.msra.gmra.mxu1 %vm3839_vm6, %v2295_v61 }
 0x280   :  { %v657_v19 = vpop.xlane.xlu1 %656  ;;  %v643_v26 = vpop.xlane.xlu0 %642 }
 0x281   :  { %v658_v9 = vcvt.f32.s32 %v657_v19  ;;  %v644_v38 = vcvt.f32.s32 %v643_v26  ;;  %vm3840_vm7 = vcmp.eq.s32.totalorder %v3868_v54, %v3044_v30  ;;  %v799_v26 = vcvt.f32.s32 %v2928_v31 }
 0x282   :  { %2166 = vmatprep.mubr.msk.f32.mxu1 %vm3840_vm7, %v2295_v61 }
 0x283   :  { %v3060_v42 = vadd.s32 %v660_v16, %v658_v9  ;;  %v3062_v57 = vadd.s32 %v646_v36, %v644_v38  ;;  %2167 = vmatmul.mubr.msk.f32.gmra.mxu1 %vm3841_vm8, %v2295_v61  ;;  %v1023_v9 = vcvt.f32.s32 %v2949_v13  ;;  %v771_v13 = vcvt.f32.s32 %v2923_v21 }
 0x284   :  { %v685_v15 = vpop.xlane.xlu1 %684  ;;  %v671_v20 = vpop.xlane.xlu0 %670 }
 0x285   :  { %v686_v39 = vcvt.f32.s32 %v685_v15  ;;  %v672_v55 = vcvt.f32.s32 %v671_v20  ;;  %vm1030_vm9 = vcmp.eq.s32.totalorder %v3868_v54, %v3062_v57  ;;  %vm1031_vm10 = vcmp.eq.s32.totalorder %v3868_v54, %v3060_v42  ;;  %v2219_v42 = vld [vmem:[%s3817_s0] sm:$0xff] }
 0x286   :  { %2169 = vmatprep.mubr.msk.f32.mxu1 %vm1030_vm9, %v2295_v61  ;;  %v1024_v20 = vshll.u32 %v1023_v9, 16 }
 0x287   :  { %v3078_v1 = vadd.s32 %v688_v24, %v686_v39  ;;  %v3080_v37 = vadd.s32 %v674_v22, %v672_v55  ;;  %2170 = vmatmul.mubr.msk.f32.gmra.mxu1 %vm1031_vm10, %v2295_v61  ;;  %v800_v22 = vshll.u32 %v799_v26, 16  ;;  %v1009_v39 = vcvt.f32.s32 %v2959_v48 }
 0x288   :  { %v713_v4 = vpop.xlane.xlu1 %712  ;;  %v699_v63 = vpop.xlane.xlu0 %698 }
 0x289   :  { %v714_v35 = vcvt.f32.s32 %v713_v4  ;;  %v700_v14 = vcvt.f32.s32 %v699_v63  ;;  %vm1032_vm11 = vcmp.eq.s32.totalorder %v3868_v54, %v3080_v37  ;;  %vm1033_vm12 = vcmp.eq.s32.totalorder %v3868_v54, %v3078_v1  ;;  %v2220_v37 = vld [vmem:[%s3817_s0 + $0x8] sm:$0xff] }
 0x28a   :  { %2172 = vmatprep.mubr.msk.f32.mxu1 %vm1032_vm11, %v2295_v61  ;;  %v786_v4 = vshll.u32 %v785_v45, 16  ;;  %v996_v63 = vshll.u32 %v995_v11, 16  ;;  %v1010_v51 = vshll.u32 %v1009_v39, 16 }
 0x28b   :  { %v3096_v3 = vadd.s32 %v716_v32, %v714_v35  ;;  %v3098_v46 = vadd.s32 %v702_v0, %v700_v14  ;;  %2173 = vmatmul.mubr.msk.f32.gmra.mxu1 %vm1033_vm12, %v2295_v61  ;;  %v757_v14 = vcvt.f32.s32 %v2969_v53  ;;  %v772_v53 = vshll.u32 %v771_v13, 16 }
 0x28c   :  { %v741_v43 = vpop.xlane.xlu1 %740  ;;  %v727_v40 = vpop.xlane.xlu0 %726 }
 0x28d   :  { %v742_v10 = vcvt.f32.s32 %v741_v43  ;;  %v728_v47 = vcvt.f32.s32 %v727_v40  ;;  %vm1034_vm13 = vcmp.eq.s32.totalorder %v3868_v54, %v3098_v46  ;;  %vm1035_vm14 = vcmp.eq.s32.totalorder %v3868_v54, %v3096_v3  ;;  %v2221_v46 = vld [vmem:[%s3817_s0 + $0x10] sm:$0xff] }
 0x28e   :  { %2175 = vmatprep.mubr.msk.f32.mxu1 %vm1034_vm13, %v2295_v61 }
 0x28f   :  { %v3112_v52 = vadd.s32 %v744_v8, %v742_v10  ;;  %v3114_v16 = vadd.s32 %v730_v5, %v728_v47  ;;  %2176 = vmatmul.mubr.msk.f32.gmra.mxu1 %vm1035_vm14, %v2295_v61  ;;  %v982_v10 = vshll.u32 %v981_v28, 16  ;;  %v813_v47 = vcvt.f32.s32 %v2954_v34 }
 0x290   :  { %v769_v27 = vpop.xlane.xlu1 %768 }
 0x291   :  { %vm1036_vm15 = vcmp.eq.s32.totalorder %v3868_v54, %v3114_v16  ;;  %vm1037_vm1 = vcmp.eq.s32.totalorder %v3868_v54, %v3112_v52  ;;  %v770_v48 = vcvt.f32.s32 %v769_v27 }
 0x292   :  { %2178 = vmatprep.mubr.msk.f32.mxu1 %vm1036_vm15, %v2295_v61 }
 0x293   :  { %2179 = vmatmul.mubr.msk.f32.gmra.mxu1 %vm1037_vm1, %v2295_v61 }
 0x294   :  { %v797_v12 = vpop.xlane.xlu1 %796 }
 0x295   :  { %v798_v38 = vcvt.f32.s32 %v797_v12  ;;  %v758_v12 = vshll.u32 %v757_v14, 16 }
 0x297   :  { %v3137_v32 = vadd.s32 %v800_v22, %v798_v38  ;;  %v953_v22 = vcvt.f32.s32 %v2964_v50 }
 0x298   :  { %v783_v19 = vpop.xlane.xlu1 %782 }
 0x299   :  { %v784_v0 = vcvt.f32.s32 %v783_v19  ;;  %vm1041_vm3 = vcmp.eq.s32.totalorder %v3868_v54, %v3137_v32  ;;  %v967_v19 = vcvt.f32.s32 %v2979_v59  ;;  %v814_v59 = vshll.u32 %v813_v47, 16 }
 0x29a   :  { %v954_v13 = vshll.u32 %v953_v22, 16  ;;  %v897_v22 = vcvt.f32.s32 %v3017_v41 }
 0x29b   :  { %v787_v5 = vadd.s32 %v786_v4, %v784_v0  ;;  %v968_v11 = vshll.u32 %v967_v19, 16 }
 0x29c   :  { %v898_v41 = vshll.u32 %v897_v22, 16 }
 0x29d   :  { %vm1040_vm0 = vcmp.eq.s32.totalorder %v3868_v54, %v787_v5 }
 0x2ac   :  { %v993_v36 = vpop.xlane.xlu0 %992 }
 0x2ad   :  { %v994_v31 = vcvt.f32.s32 %v993_v36  ;;  %v773_v36 = vadd.s32 %v772_v53, %v770_v48  ;;  %v925_v48 = vcvt.f32.s32 %v2994_v60 }
 0x2ae   :  { %v979_v24 = vpop.xlane.xlu1 %978 }
 0x2af   :  { %v3152_v21 = vadd.s32 %v996_v63, %v994_v31  ;;  %v980_v2 = vcvt.f32.s32 %v979_v24  ;;  %vm1039_vm7 = vcmp.eq.s32.totalorder %v3868_v54, %v773_v36  ;;  %v841_v63 = vcvt.f32.s32 %v2999_v23 }
 0x2b0   :  { %v1021_v15 = vpop.xlane.xlu0 %1020  ;;  %v883_v36 = vcvt.f32.s32 %v3013_v33 }
 0x2b1   :  { %v1022_v55 = vcvt.f32.s32 %v1021_v15  ;;  %v3169_v24 = vadd.s32 %v982_v10, %v980_v2  ;;  %vm1055_vm5 = vcmp.eq.s32.totalorder %v3868_v54, %v3152_v21  ;;  %v827_v15 = vcvt.f32.s32 %v2989_v58 }
 0x2b2   :  { %v811_v49 = vpop.xlane.xlu1 %810  ;;  %v855_v58 = vcvt.f32.s32 %v2974_v56  ;;  %v842_v5 = vshll.u32 %v841_v63, 16 }
 0x2b3   :  { %v3139_v44 = vadd.s32 %v1024_v20, %v1022_v55  ;;  %v812_v9 = vcvt.f32.s32 %v811_v49  ;;  %vm1054_vm8 = vcmp.eq.s32.totalorder %v3868_v54, %v3169_v24  ;;  %v869_v49 = vcvt.f32.s32 %v2984_v62 }
 0x2b4   :  { %v1007_v35 = vpop.xlane.xlu0 %1006  ;;  %v828_v4 = vshll.u32 %v827_v15, 16  ;;  %v856_v23 = vshll.u32 %v855_v58, 16 }
 0x2b5   :  { %v1008_v8 = vcvt.f32.s32 %v1007_v35  ;;  %vm3845_vm2 = vcmp.eq.s32.totalorder %v3868_v54, %v3139_v44  ;;  %v3183_v39 = vadd.s32 %v814_v59, %v812_v9  ;;  %v884_v59 = vshll.u32 %v883_v36, 16 }
 0x2b6   :  { %v951_v43 = vpop.xlane.xlu1 %950  ;;  %2065 = vmatprep.subr.msk.mxu0 %vm3845_vm2, %v2295_v61 }
 0x2b7   :  { %v3154_v40 = vadd.s32 %v1010_v51, %v1008_v8  ;;  %2066 = vmatpush3.xpose.msk.msra.mxu0 %vm1041_vm3, %v2295_v61  ;;  %v952_v50 = vcvt.f32.s32 %v951_v43  ;;  %v870_v8 = vshll.u32 %v869_v49, 16  ;;  %v939_v43 = vcvt.f32.s32 %v3008_v25 }
 0x2b8   :  { %v755_v27 = vpop.xlane.xlu0 %754  ;;  %v926_v25 = vshll.u32 %v925_v48, 16 }
 0x2b9   :  { %v756_v26 = vcvt.f32.s32 %v755_v27  ;;  %vm1056_vm4 = vcmp.eq.s32.totalorder %v3868_v54, %v3154_v40  ;;  %v3207_v56 = vadd.s32 %v954_v13, %v952_v50  ;;  %v911_v27 = vcvt.f32.s32 %v3003_v6 }
 0x2ba   :  { %v853_v38 = vpop.xlane.xlu1 %852  ;;  %2067 = vmatprep.subr.msk.mxu0 %vm1056_vm4, %v2295_v61 }
 0x2bb   :  { %v759_v34 = vadd.s32 %v758_v12, %v756_v26  ;;  %2068 = vmatpush3.xpose.msk.msra.mxu0 %vm1040_vm0, %v2295_v61  ;;  %v854_v35 = vcvt.f32.s32 %v853_v38  ;;  %v940_v26 = vshll.u32 %v939_v43, 16  ;;  %v912_v33 = vshll.u32 %v911_v27, 16 }
 0x2bc   :  { %2069 = vmatprep.subr.msk.mxu0 %vm1055_vm5, %v2295_v61  ;;  %v965_v45 = vpop.xlane.xlu0 %964 }
 0x2bd   :  { %v966_v20 = vcvt.f32.s32 %v965_v45  ;;  %vm1038_vm6 = vcmp.eq.s32.totalorder %v3868_v54, %v759_v34  ;;  %v3232_v53 = vadd.s32 %v856_v23, %v854_v35 }
 0x2be   :  { %v867_v55 = vpop.xlane.xlu1 %866  ;;  %2181 = vmatprep.mubr.msk.f32.mxu1 %vm1038_vm6, %v2295_v61 }
 0x2bf   :  { %v3189_v0 = vadd.s32 %v968_v11, %v966_v20  ;;  %2182 = vmatmul.mubr.msk.f32.gmra.mxu1 %vm1039_vm7, %v2295_v61  ;;  %2070 = vmatpush3.xpose.msk.msra.mxu0 %vm1039_vm7, %v2295_v61  ;;  %vm3842_vm7 = vcmp.eq.s32.totalorder %v3868_v54, %v3183_v39  ;;  %v868_v62 = vcvt.f32.s32 %v867_v55 }
 0x2c0   :  { %2184 = vmatprep.mubr.msk.f32.mxu1 %vm1040_vm0, %v2295_v61  ;;  %2071 = vmatprep.subr.msk.mxu0 %vm1054_vm8, %v2295_v61  ;;  %v825_v31 = vpop.xlane.xlu0 %824 }
 0x2c1   :  { %v826_v28 = vcvt.f32.s32 %v825_v31  ;;  %vm1053_vm0 = vcmp.eq.s32.totalorder %v3868_v54, %v3189_v0  ;;  %v871_v60 = vadd.s32 %v870_v8, %v868_v62  ;;  %v2222_v31 = vld [vmem:[%s3817_s0 + $0x18] sm:$0xff] }
 0x2c2   :  { %v923_v51 = vpop.xlane.xlu1 %922 }
 0x2c3   :  { %v3209_v14 = vadd.s32 %v828_v4, %v826_v28  ;;  %2185 = vmatmul.mubr.msk.f32.gmra.mxu1 %vm1041_vm3, %v2295_v61  ;;  %2072 = vmatpush3.xpose.msk.msra.mxu0 %vm1038_vm6, %v2295_v61  ;;  %v924_v10 = vcvt.f32.s32 %v923_v51  ;;  %vm1052_vm3 = vcmp.eq.s32.totalorder %v3868_v54, %v3207_v56  ;;  %v2223_v56 = vld [vmem:[%s3817_s0 + $0x20] sm:$0xff] }
 0x2c4   :  { %2187 = vmatprep.mubr.msk.f32.mxu1 %vm3842_vm7, %v2295_v61  ;;  %2073 = vmatprep.subr.msk.mxu0 %vm1053_vm0, %v2295_v61  ;;  %v839_v32 = vpop.xlane.xlu0 %838  ;;  %vm3846_vm7 = vcmp.eq.s32.totalorder %v3868_v54, %v3232_v53 }
 0x2c5   :  { %v840_v2 = vcvt.f32.s32 %v839_v32  ;;  %vm3843_vm6 = vcmp.eq.s32.totalorder %v3868_v54, %v3209_v14  ;;  %v927_v6 = vadd.s32 %v926_v25, %v924_v10 }
 0x2c6   :  { %v909_v12 = vpop.xlane.xlu1 %908 }
 0x2c7   :  { %v3234_v47 = vadd.s32 %v842_v5, %v840_v2  ;;  %2188 = vmatmul.mubr.msk.f32.gmra.mxu1 %vm3843_vm6, %v2295_v61  ;;  %2074 = vmatpush3.xpose.msk.msra.mxu0 %vm1037_vm1, %v2295_v61  ;;  %v910_v52 = vcvt.f32.s32 %v909_v12  ;;  %vm1046_vm6 = vcmp.eq.s32.totalorder %v3868_v54, %v871_v60 }
 0x2c8   :  { %2075 = vmatprep.subr.msk.mxu0 %vm1052_vm3, %v2295_v61  ;;  %v937_v19 = vpop.xlane.xlu0 %936 }
 0x2c9   :  { %v938_v9 = vcvt.f32.s32 %v937_v19  ;;  %vm3844_vm1 = vcmp.eq.s32.totalorder %v3868_v54, %v3234_v47  ;;  %v913_v16 = vadd.s32 %v912_v33, %v910_v52  ;;  %v2225_v52 = vld [vmem:[%s3817_s0 + $0x30] sm:$0xff] }
 0x2ca   :  { %2190 = vmatprep.mubr.msk.f32.mxu1 %vm3844_vm1, %v2295_v61 }
 0x2cb   :  { %v941_v38 = vadd.s32 %v940_v26, %v938_v9  ;;  %2191 = vmatmul.mubr.msk.f32.gmra.mxu1 %vm3846_vm7, %v2295_v61  ;;  %2076 = vmatpush3.xpose.msk.msra.mxu0 %vm1036_vm15, %v2295_v61  ;;  %vm1050_vm15 = vcmp.eq.s32.totalorder %v3868_v54, %v927_v6  ;;  %vm1049_vm7 = vcmp.eq.s32.totalorder %v3868_v54, %v913_v16 }
 0x2cc   :  { %2193 = vmatprep.mubr.msk.f32.mxu1 %vm1046_vm6, %v2295_v61  ;;  %v881_v34 = vpop.xlane.xlu0 %880 }
 0x2cd   :  { %v882_v45 = vcvt.f32.s32 %v881_v34  ;;  %vm1051_vm1 = vcmp.eq.s32.totalorder %v3868_v54, %v941_v38 }
 0x2ce   :  { %2077 = vmatprep.subr.msk.mxu0 %vm1051_vm1, %v2295_v61 }
 0x2cf   :  { %v885_v11 = vadd.s32 %v884_v59, %v882_v45  ;;  %2078 = vmatpush3.xpose.msk.msra.mxu0 %vm1035_vm14, %v2295_v61 }
 0x2d0   :  { %2079 = vmatprep.subr.msk.mxu0 %vm1050_vm15, %v2295_v61  ;;  %v895_v15 = vpop.xlane.xlu0 %894 }
 0x2d1   :  { %v896_v20 = vcvt.f32.s32 %v895_v15  ;;  %vm1047_vm2 = vcmp.eq.s32.totalorder %v3868_v54, %v885_v11 }
 0x2d2   :  { %2194 = vmatmul.mubr.msk.f32.gmra.mxu1 %vm1047_vm2, %v2295_v61 }
 0x2d3   :  { %v899_v55 = vadd.s32 %v898_v41, %v896_v20  ;;  %2080 = vmatpush3.xpose.msk.msra.mxu0 %vm1034_vm13, %v2295_v61  ;;  %vm3875_vm13 = vcmp.eq.s32.totalorder %v3868_v54, %v3028_v7 }
 0x2d4   :  { %2081 = vmatprep.subr.msk.mxu0 %vm1049_vm7, %v2295_v61 }
 0x2d5   :  { %vm1048_vm14 = vcmp.eq.s32.totalorder %v3868_v54, %v899_v55 }
 0x2d6   :  { %2196 = vmatprep.mubr.msk.f32.mxu1 %vm1048_vm14, %v2295_v61 }
 0x2d7   :  { %2197 = vmatmul.mubr.msk.f32.gmra.mxu1 %vm1049_vm7, %v2295_v61  ;;  %2082 = vmatpush3.xpose.msk.msra.mxu0 %vm1033_vm12, %v2295_v61  ;;  %vm3874_vm12 = vcmp.eq.s32.totalorder %v3868_v54, %v3209_v14  ;;  %vm3878_vm7 = vcmask 261120  }
 0x2d8   :  { %2199 = vmatprep.mubr.msk.f32.mxu1 %vm1050_vm15, %v2295_v61  ;;  %2083 = vmatprep.subr.msk.mxu0 %vm1048_vm14, %v2295_v61 }
 0x2db   :  { %2200 = vmatmul.mubr.msk.f32.gmra.mxu1 %vm1051_vm1, %v2295_v61  ;;  %2084 = vmatpush3.xpose.msk.msra.mxu0 %vm1032_vm11, %v2295_v61  ;;  %vm3873_vm11 = vcmp.eq.s32.totalorder %v3868_v54, %v3044_v30 }
 0x2dc   :  { %2202 = vmatprep.mubr.msk.f32.mxu1 %vm1052_vm3, %v2295_v61  ;;  %2085 = vmatprep.subr.msk.mxu0 %vm1047_vm2, %v2295_v61  ;;  %vm3876_vm2 = vcmp.eq.s32.totalorder %v3868_v54, %v3183_v39 }
 0x2df   :  { %2203 = vmatmul.mubr.msk.f32.gmra.mxu1 %vm1053_vm0, %v2295_v61  ;;  %2086 = vmatpush3.xpose.msk.msra.mxu0 %vm1031_vm10, %v2295_v61  ;;  %vm3870_vm10 = vcmp.eq.s32.totalorder %v3868_v54, %v3139_v44  ;;  %vm3879_vm0 = vmmov %vm3878_vm7 }
 0x2e0   :  { %2205 = vmatprep.mubr.msk.f32.mxu1 %vm1054_vm8, %v2295_v61  ;;  %2087 = vmatprep.subr.msk.mxu0 %vm1046_vm6, %v2295_v61  ;;  %vm3869_vm8 = vcmp.eq.s32.totalorder %v3868_v54, %v3232_v53  ;;  %vm3880_vm6 = vmmov %vm3879_vm0 }
 0x2e1   :  { %vm3881_vm3 = vmmov %vm3879_vm0 }
 0x2e2   :  { %vm3882_vm1 = vmmov %vm3879_vm0 }
 0x2e3   :  { %2206 = vmatmul.mubr.msk.f32.gmra.mxu1 %vm1055_vm5, %v2295_v61  ;;  %2088 = vmatpush3.xpose.msk.msra.mxu0 %vm1030_vm9, %v2295_v61  ;;  %vm3871_vm5 = vcmp.eq.s32.totalorder %v3868_v54, %v3036_v17  ;;  %vm3872_vm9 = vcmp.eq.s32.totalorder %v3868_v54, %v3234_v47  ;;  %vm3883_vm15 = vmmov %vm3879_vm0  ;;  %v2224_v47 = vld [vmem:[%s3817_s0 + $0x28] sm:$0xff] }
 0x2e4   :  { %2208 = vmatprep.mubr.msk.f32.mxu1 %vm1056_vm4, %v2295_v61  ;;  %2089 = vmatprep.subr.msk.mxu0 %vm3869_vm8, %v2295_v61  ;;  %vm3877_vm4 = vcmp.eq.s32.totalorder %v3868_v54, %v3030_v18  ;;  %vm3884_vm14 = vmmov %vm3879_vm0 }
 0x2e5   :  { %vm3885_vm8 = vmmov %vm3879_vm0 }
 0x2e7   :  { %2209 = vmatmul.mubr.msk.f32.gmra.mxu1 %vm3870_vm10, %v2295_v61  ;;  %2090 = vmatpush3.xpose.msk.msra.mxu0 %vm3871_vm5, %v2295_v61  ;;  %vm3886_vm10 = vmmov %vm3879_vm0 }
 0x2e8   :  { %2091 = vmatprep.subr.msk.mxu0 %vm3872_vm9, %v2295_v61  ;;  %vm3887_vm5 = vmmov %vm3879_vm0 }
 0x2e9   :  { %vm3888_vm9 = vmmov %vm3879_vm0 }
 0x2eb   :  { %2092 = vmatpush3.xpose.msk.msra.mxu0 %vm3873_vm11, %v2295_v61  ;;  %vm3889_vm11 = vmmov %vm3879_vm0 }
 0x2ec   :  { %2093 = vmatprep.subr.msk.mxu0 %vm3874_vm12, %v2295_v61 }
 0x2ef   :  { %2094 = vmatpush3.xpose.msk.msra.mxu0 %vm3875_vm13, %v2295_v61 }
 0x2f0   :  { %2095 = vmatprep.subr.msk.mxu0 %vm3876_vm2, %v2295_v61 }
 0x2f3   :  { %2096 = vmatpush3.xpose.msk.msra.mxu0 %vm3877_vm4, %v2295_v61  ;;  %vm3896_vm4 = vmmov %vm3879_vm0 }
 0x2f6   :  { %2098 = vmatmul.mubr.f32.vlgmr.msra.gmra.mxu0 %v1379_v29 }
 0x33f   :  { %v2165_v17 = vpop.f32.mrf.mxu1 }
 0x340   :  { %1348 = vst.msk [vmem:[%s3820_s3 + $0x8] sm:$0xff] %vm3878_vm7, %v2165_v17  ;;  %v1474_v3 = vsub.f32 %v2220_v37, %v2165_v17  ;;  %vm3897_vm7 = vmmov %vm3879_vm0 }
 0x341   :  { %v1188_v7 = vpop.f32.mrf.mxu1 }
 0x342   :  { %1347 = vst.msk [vmem:[%s3820_s3] sm:$0xff] %vm3879_vm0, %v1188_v7  ;;  %v1473_v57 = vsub.f32 %v2219_v42, %v1188_v7  ;;  %v1506_v39 = vmul.f32 10.0, %v1474_v3  ;;  %v2227_v3 = vld [vmem:[%s3817_s0 + $0x40] sm:$0xff] }
 0x343   :  { %v2168_v30 = vpop.f32.mrf.mxu1 }
 0x344   :  { %1350 = vst.msk [vmem:[%s3820_s3 + $0x18] sm:$0xff] %vm3880_vm6, %v2168_v30  ;;  %v1505_v40 = vmul.f32 10.0, %v1473_v57  ;;  %v1476_v13 = vsub.f32 %v2222_v31, %v2168_v30  ;;  %v1538_v63 = vand.u32 2147483647, %v1506_v39  ;;  %v1602_v28 = vmul.f32 0.5, %v1506_v39  ;;  %vm3900_vm6 = vmmov %vm3882_vm1 }
 0x345   :  { %v1198_v54 = vpop.f32.mrf.mxu1 }
 0x346   :  { %1349 = vst.msk [vmem:[%s3820_s3 + $0x10] sm:$0xff] %vm3881_vm3, %v1198_v54  ;;  %v1475_v44 = vsub.f32 %v2221_v46, %v1198_v54  ;;  %v1537_v58 = vand.u32 2147483647, %v1505_v40  ;;  %v1601_v49 = vmul.f32 0.5, %v1505_v40  ;;  %v1508_v8 = vmul.f32 10.0, %v1476_v13 }
 0x347   :  { %v2171_v29 = vpop.f32.mrf.mxu1  ;;  %v1634_v48 = vmul.f32 %v1602_v28, %v1506_v39  ;;  %v1962_v32 = vadd.f32 -0.5, %v1538_v63  ;;  %vm3459_vm13 = vcmp.lt.f32.partialorder %v1538_v63, 1.0 }
 0x348   :  { %1352 = vst.msk [vmem:[%s3820_s3 + $0x28] sm:$0xff] %vm3882_vm1, %v2171_v29  ;;  %v1507_v50 = vmul.f32 10.0, %v1475_v44  ;;  %v1633_v14 = vmul.f32 %v1601_v49, %v1505_v40  ;;  %v1961_v23 = vadd.f32 -0.5, %v1537_v58  ;;  %vm3455_vm12 = vcmp.lt.f32.partialorder %v1537_v58, 1.0 }
 0x349   :  { %v1208_v18 = vpop.f32.mrf.mxu1  ;;  %v1478_v25 = vsub.f32 %v2224_v47, %v2171_v29  ;;  %v1540_v12 = vand.u32 2147483647, %v1508_v8  ;;  %v1604_v19 = vmul.f32 0.5, %v1508_v8  ;;  %v1698_v26 = vsel %vm3459_vm13, %v1634_v48, %v1962_v32  ;;  %v2229_v32 = vld [vmem:[%s3817_s0 + $0x50] sm:$0xff] }
 0x34a   :  { %1351 = vst.msk [vmem:[%s3820_s3 + $0x20] sm:$0xff] %vm3883_vm15, %v1208_v18  ;;  %v1539_v35 = vand.u32 2147483647, %v1507_v50  ;;  %v1603_v51 = vmul.f32 0.5, %v1507_v50  ;;  %v1477_v62 = vsub.f32 %v2223_v56, %v1208_v18  ;;  %v1697_v27 = vsel %vm3455_vm12, %v1633_v14, %v1961_v23  ;;  %v2226_v18 = vld [vmem:[%s3817_s0 + $0x38] sm:$0xff]  ;;  %vm3914_vm12 = vmmov %vm3882_vm1 }
 0x34b   :  { %v3401_v61 = vpop.f32.mrf.mxu1  ;;  %v1729_v33 = vsel %vm3896_vm4, %v1697_v27, 0.0  ;;  %v1510_v34 = vmul.f32 10.0, %v1478_v25  ;;  %v1636_v59 = vmul.f32 %v1604_v19, %v1508_v8  ;;  %v1964_v22 = vadd.f32 -0.5, %v1540_v12 }
 0x34c   :  { %1354 = vst.msk [vmem:[%s3820_s3 + $0x38] sm:$0xff] %vm3884_vm14, %v3401_v61  ;;  %v1635_v2 = vmul.f32 %v1603_v51, %v1507_v50  ;;  %v1963_v53 = vadd.f32 -0.5, %v1539_v35  ;;  %v1509_v60 = vmul.f32 10.0, %v1477_v62  ;;  %vm3463_vm2 = vcmp.lt.f32.partialorder %v1539_v35, 1.0  ;;  %vm3905_vm14 = vmmov %vm3882_vm1 }
 0x34d   :  { %v1218_v1 = vpop.f32.mrf.mxu1  ;;  %v1730_v45 = vsel %vm3897_vm7, %v1698_v26, 0.0  ;;  %vm3481_vm0 = vcmp.lt.f32.partialorder %v1540_v12, 1.0  ;;  %v1542_v17 = vand.u32 2147483647, %v1510_v34  ;;  %v1606_v29 = vmul.f32 0.5, %v1510_v34  ;;  %vm3918_vm7 = vmmov %vm3882_vm1 }
 0x34e   :  { %1353 = vst.msk [vmem:[%s3820_s3 + $0x30] sm:$0xff] %vm3885_vm8, %v1218_v1  ;;  %v1699_v36 = vsel %vm3463_vm2, %v1635_v2, %v1963_v53  ;;  %v1541_v9 = vand.u32 2147483647, %v1509_v60  ;;  %v1605_v6 = vmul.f32 0.5, %v1509_v60  ;;  %v1479_v38 = vsub.f32 %v2225_v52, %v1218_v1  ;;  %vm3915_vm2 = vmmov %vm3882_vm1 }
 0x34f   :  { %v3421_v21 = vpop.f32.mrf.mxu1  ;;  %v1732_v11 = vsel %vm3900_vm6, %v1699_v36, 0.0  ;;  %v1731_v15 = vadd.f32 %v1730_v45, %v1729_v33  ;;  %v1700_v30 = vsel %vm3481_vm0, %v1636_v59, %v1964_v22  ;;  %v1480_v42 = vsub.f32 %v2226_v18, %v3401_v61  ;;  %vm3919_vm0 = vmmov %vm3882_vm1 }
 0x350   :  { %1356 = vst.msk [vmem:[%s3820_s3 + $0x48] sm:$0xff] %vm3886_vm10, %v3421_v21  ;;  %v1637_v41 = vmul.f32 %v1605_v6, %v1509_v60  ;;  %v1965_v20 = vadd.f32 -0.5, %v1541_v9  ;;  %v1511_v55 = vmul.f32 10.0, %v1479_v38  ;;  %vm3486_vm3 = vcmp.lt.f32.partialorder %v1541_v9, 1.0  ;;  %vm3908_vm10 = vmmov %vm3882_vm1  ;;  %v2230_v6 = vld [vmem:[%s3817_s0 + $0x58] sm:$0xff] }
 0x351   :  { %v3428_v24 = vpop.f32.mrf.mxu1  ;;  %v1733_v54 = vadd.f32 %v1732_v11, %v1731_v15  ;;  %v1734_v44 = vsel %vm3882_vm1, %v1700_v30, 0.0  ;;  %v1638_v40 = vmul.f32 %v1606_v29, %v1510_v34  ;;  %v1966_v39 = vadd.f32 -0.5, %v1542_v17 }
 0x352   :  { %1355 = vst.msk [vmem:[%s3820_s3 + $0x40] sm:$0xff] %vm3887_vm5, %v3428_v24  ;;  %v1701_v57 = vsel %vm3486_vm3, %v1637_v41, %v1965_v20  ;;  %v1543_v1 = vand.u32 2147483647, %v1511_v55  ;;  %v1607_v37 = vmul.f32 0.5, %v1511_v55  ;;  %v1481_v46 = vsub.f32 %v2227_v3, %v3428_v24  ;;  %v2228_v24 = vld [vmem:[%s3817_s0 + $0x48] sm:$0xff]  ;;  %vm3922_vm3 = vmmov %vm3919_vm0 }
 0x353   :  { %v3435_v0 = vpop.f32.mrf.mxu1  ;;  %v1735_v50 = vadd.f32 %v1734_v44, %v1733_v54  ;;  %v1512_v58 = vmul.f32 10.0, %v1480_v42  ;;  %vm3503_vm15 = vcmp.lt.f32.partialorder %v1542_v17, 1.0  ;;  %v1736_v61 = vsel %vm3905_vm14, %v1701_v57, 0.0  ;;  %v2231_v42 = vld [vmem:[%s3817_s0 + $0x68] sm:$0xff]  ;;  %vm3925_vm14 = vmmov %vm3919_vm0 }
 0x354   :  { %1358 = vst.msk [vmem:[%s3820_s3 + $0x58] sm:$0xff] %vm3888_vm9, %v3435_v0  ;;  %v1639_v31 = vmul.f32 %v1607_v37, %v1511_v55  ;;  %v1967_v13 = vadd.f32 -0.5, %v1543_v1  ;;  %v1513_v63 = vmul.f32 10.0, %v1481_v46  ;;  %vm3508_vm8 = vcmp.lt.f32.partialorder %v1543_v1, 1.0  ;;  %vm3911_vm9 = vmmov %vm3882_vm1 }
 0x355   :  { %v3445_v4 = vpop.f32.mrf.mxu1  ;;  %v1482_v35 = vsub.f32 %v2228_v24, %v3421_v21  ;;  %v1702_v51 = vsel %vm3503_vm15, %v1638_v40, %v1966_v39  ;;  %v1737_v56 = vadd.f32 %v1736_v61, %v1735_v50  ;;  %v1544_v62 = vand.u32 2147483647, %v1512_v58  ;;  %vm3923_vm1 = vmmov %vm3919_vm0  ;;  %v2232_v50 = vld [vmem:[%s3817_s0 + $0x60] sm:$0xff] }
 0x356   :  { %1357 = vst.msk [vmem:[%s3820_s3 + $0x50] sm:$0xff] %vm3889_vm11, %v3445_v4  ;;  %v1608_v14 = vmul.f32 0.5, %v1512_v58  ;;  %v1703_v23 = vsel %vm3508_vm8, %v1639_v31, %v1967_v13  ;;  %v1545_v8 = vand.u32 2147483647, %v1513_v63  ;;  %v1609_v48 = vmul.f32 0.5, %v1513_v63  ;;  %vm3924_vm15 = vmmov %vm3919_vm0 }
 0x357   :  { %v1483_v5 = vsub.f32 %v2229_v32, %v3445_v4  ;;  %v1738_v43 = vsel %vm3908_vm10, %v1702_v51, 0.0  ;;  %v1514_v21 = vmul.f32 10.0, %v1482_v35  ;;  %v1968_v53 = vadd.f32 -0.5, %v1544_v62  ;;  %v2234_v32 = vld [vmem:[%s3817_s0 + $0x70] sm:$0xff]  ;;  %vm3928_vm10 = vmmov %vm3919_vm0 }
 0x358   :  { %v1640_v2 = vmul.f32 %v1608_v14, %v1512_v58  ;;  %v1739_v60 = vadd.f32 %v1738_v43, %v1737_v56  ;;  %vm3525_vm5 = vcmp.lt.f32.partialorder %v1544_v62, 1.0  ;;  %v1740_v47 = vsel %vm3911_vm9, %v1703_v23, 0.0  ;;  %vm3931_vm9 = vmmov %vm3919_vm0 }
 0x359   :  { %v1641_v25 = vmul.f32 %v1609_v48, %v1513_v63  ;;  %v1969_v27 = vadd.f32 -0.5, %v1545_v8  ;;  %v1515_v12 = vmul.f32 10.0, %v1483_v5  ;;  %v1546_v19 = vand.u32 2147483647, %v1514_v21  ;;  %v2233_v63 = vld [vmem:[%s3817_s0 + $0x78] sm:$0xff] }
 0x35a   :  { %vm3530_vm11 = vcmp.lt.f32.partialorder %v1545_v8, 1.0  ;;  %v1704_v4 = vsel %vm3525_vm5, %v1640_v2, %v1968_v53  ;;  %v1741_v36 = vadd.f32 %v1740_v47, %v1739_v60  ;;  %v1610_v9 = vmul.f32 0.5, %v1514_v21  ;;  %v2235_v60 = vld [vmem:[%s3817_s0 + $0x88] sm:$0xff]  ;;  %v2240_v2 = vld [vmem:[%s3817_s0 + $0xa0] sm:$0xff] }
 0x35b   :  { %v1484_v52 = vsub.f32 %v2230_v6, %v3435_v0  ;;  %v1705_v38 = vsel %vm3530_vm11, %v1641_v25, %v1969_v27  ;;  %v1547_v33 = vand.u32 2147483647, %v1515_v12  ;;  %v1611_v34 = vmul.f32 0.5, %v1515_v12  ;;  %vm3932_vm11 = vmmov %vm3919_vm0 }
 0x35c   :  { %v1742_v59 = vsel %vm3914_vm12, %v1704_v4, 0.0  ;;  %v1642_v22 = vmul.f32 %v1610_v9, %v1514_v21  ;;  %v1970_v45 = vadd.f32 -0.5, %v1546_v19  ;;  %vm1578_vm13 = vcmp.lt.f32.partialorder %v1546_v19, 1.0  ;;  %v2236_v9 = vld [vmem:[%s3817_s0 + $0x80] sm:$0xff] }
 0x35d   :  { %v1743_v16 = vadd.f32 %v1742_v59, %v1741_v36  ;;  %v1516_v11 = vmul.f32 10.0, %v1484_v52  ;;  %v1744_v15 = vsel %vm3915_vm2, %v1705_v38, 0.0  ;;  %v1643_v41 = vmul.f32 %v1611_v34, %v1515_v12  ;;  %vm3936_vm2 = vmmov %vm3919_vm0 }
 0x35e   :  { %v1971_v20 = vadd.f32 -0.5, %v1547_v33  ;;  %vm3544_vm4 = vcmp.lt.f32.partialorder %v1547_v33, 1.0  ;;  %v1706_v0 = vsel %vm1578_vm13, %v1642_v22, %v1970_v45  ;;  %vm3935_vm13 = vmmov %vm3919_vm0 }
 0x35f   :  { %v1745_v17 = vadd.f32 %v1744_v15, %v1743_v16  ;;  %v1548_v7 = vand.u32 2147483647, %v1516_v11  ;;  %v1612_v30 = vmul.f32 0.5, %v1516_v11  ;;  %v1746_v18 = vsel %vm3918_vm7, %v1706_v0, 0.0 }
 0x360   :  { %v1707_v54 = vsel %vm3544_vm4, %v1643_v41, %v1971_v20  ;;  %vm3937_vm4 = vmmov %vm3919_vm0 }
 0x361   :  { %v1644_v1 = vmul.f32 %v1612_v30, %v1516_v11  ;;  %v1972_v37 = vadd.f32 -0.5, %v1548_v7  ;;  %v1747_v3 = vadd.f32 %v1746_v18, %v1745_v17  ;;  %vm3558_vm6 = vcmp.lt.f32.partialorder %v1548_v7, 1.0 }
 0x362   :  { %v1748_v40 = vsel %vm3922_vm3, %v1707_v54, 0.0  ;;  %vm3940_vm3 = vmmov %vm3919_vm0 }
 0x363   :  { %v1708_v24 = vsel %vm3558_vm6, %v1644_v1, %v1972_v37  ;;  %v1749_v35 = vadd.f32 %v1748_v40, %v1747_v3  ;;  %v2237_v3 = vld [vmem:[%s3817_s0 + $0x98] sm:$0xff] }
 0x364   :  { %v1750_v21 = vsel %vm3928_vm10, %v1708_v24, 0.0  ;;  %vm3946_vm10 = vmmov %vm3919_vm0 }
 0x365   :  { %v1751_v25 = vadd.f32 %v1750_v21, %v1749_v35  ;;  %v2239_v35 = vld [vmem:[%s3817_s0 + $0xa8] sm:$0xff] }
 0x37f   :  { %v2183_v29 = vpop.f32.mrf.mxu1 }
 0x380   :  { %1360 = vst.msk [vmem:[%s3820_s3 + $0x68] sm:$0xff] %vm3919_vm0, %v2183_v29  ;;  %v1486_v57 = vsub.f32 %v2231_v42, %v2183_v29 }
 0x381   :  { %v1248_v46 = vpop.f32.mrf.mxu1 }
 0x382   :  { %v1518_v39 = vmul.f32 10.0, %v1486_v57  ;;  %1359 = vst.msk [vmem:[%s3820_s3 + $0x60] sm:$0xff] %vm3923_vm1, %v1248_v46  ;;  %v1485_v58 = vsub.f32 %v2232_v50, %v1248_v46  ;;  %vm3941_vm1 = vmmov %vm3919_vm0 }
 0x383   :  { %v2186_v49 = vpop.f32.mrf.mxu1 }
 0x384   :  { %v1550_v61 = vand.u32 2147483647, %v1518_v39  ;;  %v1614_v31 = vmul.f32 0.5, %v1518_v39  ;;  %v1517_v13 = vmul.f32 10.0, %v1485_v58  ;;  %1362 = vst.msk [vmem:[%s3820_s3 + $0x78] sm:$0xff] %vm3924_vm15, %v2186_v49  ;;  %v1488_v28 = vsub.f32 %v2233_v63, %v2186_v49 }
 0x385   :  { %v1258_v51 = vpop.f32.mrf.mxu1 }
 0x386   :  { %v1646_v56 = vmul.f32 %v1614_v31, %v1518_v39  ;;  %v1974_v62 = vadd.f32 -0.5, %v1550_v61  ;;  %v1549_v14 = vand.u32 2147483647, %v1517_v13  ;;  %1361 = vst.msk [vmem:[%s3820_s3 + $0x70] sm:$0xff] %vm3925_vm14, %v1258_v51  ;;  %vm3583_vm8 = vcmp.lt.f32.partialorder %v1550_v61, 1.0  ;;  %v2238_v39 = vld [vmem:[%s3817_s0 + $0x90] sm:$0xff]  ;;  %vm3944_vm14 = vmmov %vm3919_vm0 }
 0x387   :  { %v1613_v8 = vmul.f32 0.5, %v1517_v13  ;;  %v1520_v48 = vmul.f32 10.0, %v1488_v28  ;;  %v1487_v5 = vsub.f32 %v2234_v32, %v1258_v51  ;;  %v2189_v43 = vpop.f32.mrf.mxu1 }
 0x388   :  { %vm3591_vm5 = vcmp.lt.f32.partialorder %v1549_v14, 1.0  ;;  %v1973_v53 = vadd.f32 -0.5, %v1549_v14  ;;  %1364 = vst.msk [vmem:[%s3820_s3 + $0x88] sm:$0xff] %vm3931_vm9, %v2189_v43  ;;  %v1490_v10 = vsub.f32 %v2235_v60, %v2189_v43  ;;  %v1710_v26 = vsel %vm3583_vm8, %v1646_v56, %v1974_v62  ;;  %vm3945_vm8 = vmmov %vm3919_vm0 }
 0x389   :  { %v1645_v47 = vmul.f32 %v1613_v8, %v1517_v13  ;;  %v1552_v27 = vand.u32 2147483647, %v1520_v48  ;;  %v1616_v12 = vmul.f32 0.5, %v1520_v48  ;;  %v1268_v19 = vpop.f32.mrf.mxu1  ;;  %v1519_v4 = vmul.f32 10.0, %v1487_v5 }
 0x38a   :  { %v1522_v36 = vmul.f32 10.0, %v1490_v10  ;;  %1363 = vst.msk [vmem:[%s3820_s3 + $0x80] sm:$0xff] %vm3932_vm11, %v1268_v19  ;;  %v1489_v6 = vsub.f32 %v2236_v9, %v1268_v19  ;;  %v1754_v15 = vsel %vm3937_vm4, %v1710_v26, 0.0  ;;  %vm3954_vm4 = vmmov %vm3919_vm0 }
 0x38b   :  { %v1709_v52 = vsel %vm3591_vm5, %v1645_v47, %v1973_v53  ;;  %vm3613_vm12 = vcmp.lt.f32.partialorder %v1552_v27, 1.0  ;;  %v1648_v33 = vmul.f32 %v1616_v12, %v1520_v48  ;;  %v1976_v34 = vadd.f32 -0.5, %v1552_v27  ;;  %v2192_v59 = vpop.f32.mrf.mxu1  ;;  %vm3947_vm5 = vmmov %vm3919_vm0 }
 0x38c   :  { %v1752_v22 = vsel %vm3935_vm13, %v1709_v52, 0.0  ;;  %v1551_v45 = vand.u32 2147483647, %v1519_v4  ;;  %v1615_v16 = vmul.f32 0.5, %v1519_v4  ;;  %v1554_v11 = vand.u32 2147483647, %v1522_v36 }
 0x38d   :  { %1366 = vst.msk [vmem:[%s3820_s3 + $0x98] sm:$0xff] %vm3936_vm2, %v2192_v59  ;;  %v1753_v41 = vadd.f32 %v1752_v22, %v1751_v25  ;;  %v1618_v20 = vmul.f32 0.5, %v1522_v36  ;;  %v1521_v55 = vmul.f32 10.0, %v1489_v6  ;;  %v1278_v0 = vpop.f32.mrf.mxu1  ;;  %v1712_v17 = vsel %vm3613_vm12, %v1648_v33, %v1976_v34  ;;  %vm3950_vm12 = vmmov %vm3919_vm0 }
 0x38e   :  { %vm1583_vm7 = vcmp.lt.f32.partialorder %v1551_v45, 1.0  ;;  %v1647_v7 = vmul.f32 %v1615_v16, %v1519_v4  ;;  %v1975_v30 = vadd.f32 -0.5, %v1551_v45  ;;  %1365 = vst.msk [vmem:[%s3820_s3 + $0x90] sm:$0xff] %vm3919_vm0, %v1278_v0  ;;  %vm3629_vm6 = vcmp.lt.f32.partialorder %v1554_v11, 1.0  ;;  %vm3953_vm2 = vmmov %vm3919_vm0 }
 0x38f   :  { %v1755_v54 = vadd.f32 %v1754_v15, %v1753_v41  ;;  %v1650_v18 = vmul.f32 %v1618_v20, %v1522_v36  ;;  %v1978_v42 = vadd.f32 -0.5, %v1554_v11  ;;  %v1553_v1 = vand.u32 2147483647, %v1521_v55  ;;  %v2241_v41 = vld [vmem:[%s3817_s0 + $0xb8] sm:$0xff] }
 0x390   :  { %v1711_v57 = vsel %vm1583_vm7, %v1647_v7, %v1975_v30  ;;  %v1617_v37 = vmul.f32 0.5, %v1521_v55  ;;  %v1492_v46 = vsub.f32 %v2237_v3, %v2192_v59  ;;  %v1491_v50 = vsub.f32 %v2238_v39, %v1278_v0  ;;  %vm3955_vm7 = vmmov %vm3919_vm0  ;;  %v2244_v39 = vld [vmem:[%s3817_s0 + $0xc0] sm:$0xff] }
 0x391   :  { %v1756_v44 = vsel %vm3940_vm3, %v1711_v57, 0.0  ;;  %v1714_v40 = vsel %vm3629_vm6, %v1650_v18, %v1978_v42  ;;  %v1758_v58 = vsel %vm3941_vm1, %v1712_v17, 0.0  ;;  %vm3643_vm15 = vcmp.lt.f32.partialorder %v1553_v1, 1.0  ;;  %v2243_v17 = vld [vmem:[%s3817_s0 + $0xc8] sm:$0xff]  ;;  %vm3958_vm6 = vmmov %vm3941_vm1 }
 0x392   :  { %v1757_v49 = vadd.f32 %v1756_v44, %v1755_v54  ;;  %v1649_v31 = vmul.f32 %v1617_v37, %v1521_v55  ;;  %v2195_v13 = vpop.f32.mrf.mxu1  ;;  %v1977_v63 = vadd.f32 -0.5, %v1553_v1  ;;  %v1524_v28 = vmul.f32 10.0, %v1492_v46  ;;  %v2242_v55 = vld [vmem:[%s3817_s0 + $0xb0] sm:$0xff]  ;;  %vm3959_vm3 = vmmov %vm3941_vm1  ;;  %v2248_v54 = vld [vmem:[%s3817_s0 + $0xe0] sm:$0xff] }
 0x393   :  { %v1523_v24 = vmul.f32 10.0, %v1491_v50  ;;  %1368 = vst.msk [vmem:[%s3820_s3 + $0xa8] sm:$0xff] %vm3944_vm14, %v2195_v13  ;;  %v1494_v51 = vsub.f32 %v2239_v35, %v2195_v13  ;;  %v1762_v56 = vsel %vm3945_vm8, %v1714_v40, 0.0  ;;  %vm3961_vm14 = vmmov %vm3941_vm1 }
 0x394   :  { %v1759_v62 = vadd.f32 %v1758_v58, %v1757_v49  ;;  %v1288_v14 = vpop.f32.mrf.mxu1  ;;  %v1713_v23 = vsel %vm3643_vm15, %v1649_v31, %v1977_v63  ;;  %v1556_v8 = vand.u32 2147483647, %v1524_v28  ;;  %v1620_v48 = vmul.f32 0.5, %v1524_v28  ;;  %vm3960_vm15 = vmmov %vm3941_vm1 }
 0x395   :  { %v1555_v32 = vand.u32 2147483647, %v1523_v24  ;;  %1367 = vst.msk [vmem:[%s3820_s3 + $0xa0] sm:$0xff] %vm3946_vm10, %v1288_v14  ;;  %v1760_v5 = vsel %vm3947_vm5, %v1713_v23, 0.0  ;;  %v1619_v43 = vmul.f32 0.5, %v1523_v24  ;;  %v1526_v21 = vmul.f32 10.0, %v1494_v51  ;;  %vm3966_vm5 = vmmov %vm3941_vm1 }
 0x396   :  { %v1493_v53 = vsub.f32 %v2240_v2, %v1288_v14  ;;  %v1761_v60 = vadd.f32 %v1760_v5, %v1759_v62  ;;  %vm3665_vm9 = vcmp.lt.f32.partialorder %v1556_v8, 1.0  ;;  %v1652_v47 = vmul.f32 %v1620_v48, %v1524_v28  ;;  %v2250_v23 = vld [vmem:[%s3817_s0 + $0xf0] sm:$0xff] }
 0x397   :  { %v1980_v25 = vadd.f32 -0.5, %v1556_v8  ;;  %v2198_v27 = vpop.f32.mrf.mxu1  ;;  %vm1587_vm11 = vcmp.lt.f32.partialorder %v1555_v32, 1.0  ;;  %v1651_v12 = vmul.f32 %v1619_v43, %v1523_v24  ;;  %v1979_v19 = vadd.f32 -0.5, %v1555_v32 }
 0x398   :  { %v1558_v26 = vand.u32 2147483647, %v1526_v21  ;;  %1370 = vst.msk [vmem:[%s3820_s3 + $0xb8] sm:$0xff] %vm3950_vm12, %v2198_v27  ;;  %v1763_v4 = vadd.f32 %v1762_v56, %v1761_v60  ;;  %v1622_v36 = vmul.f32 0.5, %v1526_v21  ;;  %v1525_v9 = vmul.f32 10.0, %v1493_v53  ;;  %vm3970_vm12 = vmmov %vm3941_vm1 }
 0x399   :  { %v1298_v6 = vpop.f32.mrf.mxu1  ;;  %v1716_v52 = vsel %vm3665_vm9, %v1652_v47, %v1980_v25  ;;  %v1715_v38 = vsel %vm1587_vm11, %v1651_v12, %v1979_v19  ;;  %v1496_v20 = vsub.f32 %v2241_v41, %v2198_v27  ;;  %vm3969_vm11 = vmmov %vm3941_vm1  ;;  %v2245_v47 = vld [vmem:[%s3817_s0 + $0xd8] sm:$0xff]  ;;  %v2246_v27 = vld [vmem:[%s3817_s0 + $0xd0] sm:$0xff] }
 0x39a   :  { %vm3675_vm13 = vcmp.lt.f32.partialorder %v1558_v26, 1.0  ;;  %v1982_v34 = vadd.f32 -0.5, %v1558_v26  ;;  %1369 = vst.msk [vmem:[%s3820_s3 + $0xb0] sm:$0xff] %vm3953_vm2, %v1298_v6  ;;  %v1764_v59 = vsel %vm3954_vm4, %v1715_v38, 0.0  ;;  %v1654_v22 = vmul.f32 %v1622_v36, %v1526_v21  ;;  %vm3972_vm2 = vmmov %vm3941_vm1 }
 0x39b   :  { %v1557_v45 = vand.u32 2147483647, %v1525_v9  ;;  %v1621_v16 = vmul.f32 0.5, %v1525_v9  ;;  %v2201_v11 = vpop.f32.mrf.mxu1  ;;  %v1765_v15 = vadd.f32 %v1764_v59, %v1763_v4  ;;  %v1495_v0 = vsub.f32 %v2242_v55, %v1298_v6 }
 0x39c   :  { %1372 = vst.msk [vmem:[%s3820_s3 + $0xc8] sm:$0xff] %vm3955_vm7, %v2201_v11  ;;  %v1498_v7 = vsub.f32 %v2243_v17, %v2201_v11  ;;  %v1718_v30 = vsel %vm3675_vm13, %v1654_v22, %v1982_v34  ;;  %v1766_v57 = vsel %vm3958_vm6, %v1716_v52, 0.0  ;;  %v1528_v37 = vmul.f32 10.0, %v1496_v20  ;;  %vm3971_vm13 = vmmov %vm3941_vm1 }
 0x39d   :  { %vm3699_vm0 = vcmp.lt.f32.partialorder %v1557_v45, 1.0  ;;  %v1653_v29 = vmul.f32 %v1621_v16, %v1525_v9  ;;  %v1981_v18 = vadd.f32 -0.5, %v1557_v45  ;;  %v1308_v42 = vpop.f32.mrf.mxu1  ;;  %v1770_v1 = vsel %vm3959_vm3, %v1718_v30, 0.0  ;;  %v2247_v16 = vld [vmem:[%s3817_s0 + $0xe8] sm:$0xff]  ;;  %vm3975_vm7 = vmmov %vm3941_vm1 }
 0x39e   :  { %v1527_v3 = vmul.f32 10.0, %v1495_v0  ;;  %1371 = vst.msk [vmem:[%s3820_s3 + $0xc0] sm:$0xff] %vm3941_vm1, %v1308_v42  ;;  %v1767_v44 = vadd.f32 %v1766_v57, %v1765_v15  ;;  %v1530_v40 = vmul.f32 10.0, %v1498_v7  ;;  %v1497_v50 = vsub.f32 %v2244_v39, %v1308_v42 }
 0x39f   :  { %v1717_v46 = vsel %vm3699_vm0, %v1653_v29, %v1981_v18  ;;  %v2204_v58 = vpop.f32.mrf.mxu1  ;;  %v1560_v61 = vand.u32 2147483647, %v1528_v37  ;;  %v1624_v31 = vmul.f32 0.5, %v1528_v37  ;;  %vm3976_vm0 = vmmov %vm3941_vm1 }
 0x3a0   :  { %v1768_v49 = vsel %vm3960_vm15, %v1717_v46, 0.0  ;;  %v1559_v13 = vand.u32 2147483647, %v1527_v3  ;;  %1374 = vst.msk [vmem:[%s3820_s3 + $0xd8] sm:$0xff] %vm3961_vm14, %v2204_v58  ;;  %v1623_v28 = vmul.f32 0.5, %v1527_v3  ;;  %v1626_v35 = vmul.f32 0.5, %v1530_v40  ;;  %vm3977_vm6 = vmmov %vm3976_vm0 }
 0x3a1   :  { %v1769_v63 = vadd.f32 %v1768_v49, %v1767_v44  ;;  %v1562_v24 = vand.u32 2147483647, %v1530_v40  ;;  %v1318_v51 = vpop.f32.mrf.mxu1  ;;  %vm3719_vm8 = vcmp.lt.f32.partialorder %v1560_v61, 1.0  ;;  %v1656_v62 = vmul.f32 %v1624_v31, %v1528_v37  ;;  %vm3980_vm15 = vmmov %vm3976_vm0 }
 0x3a2   :  { %v1984_v14 = vadd.f32 -0.5, %v1560_v61  ;;  %vm3723_vm10 = vcmp.lt.f32.partialorder %v1559_v13, 1.0  ;;  %1373 = vst.msk [vmem:[%s3820_s3 + $0xd0] sm:$0xff] %vm3966_vm5, %v1318_v51  ;;  %v1655_v8 = vmul.f32 %v1623_v28, %v1527_v3  ;;  %v1983_v48 = vadd.f32 -0.5, %v1559_v13  ;;  %v2249_v61 = vld [vmem:[%s3817_s0 + $0xf8] sm:$0xff]  ;;  %vm3981_vm14 = vmmov %vm3976_vm0  ;;  %s2297_s0 = smov [#allocation2]  }
 0x3a3   :  { %v1771_v32 = vadd.f32 %v1770_v1, %v1769_v63  ;;  %vm3731_vm9 = vcmp.lt.f32.partialorder %v1562_v24, 1.0  ;;  %v2207_v43 = vpop.f32.mrf.mxu1  ;;  %v1658_v2 = vmul.f32 %v1626_v35, %v1530_v40  ;;  %v1986_v53 = vadd.f32 -0.5, %v1562_v24  ;;  %s1808_s2 = sshll.u32 %s2297_s0, 4  ;;  %s1809_s2 = int_to_ptr.vmem [resolvable:$true] %s1808_s2 }
 0x3a4   :  { %v1720_v21 = vsel %vm3719_vm8, %v1656_v62, %v1984_v14  ;;  %v1529_v60 = vmul.f32 10.0, %v1497_v50  ;;  %1376 = vst.msk [vmem:[%s3820_s3 + $0xe8] sm:$0xff] %vm3969_vm11, %v2207_v43  ;;  %v1719_v10 = vsel %vm3723_vm10, %v1655_v8, %v1983_v48  ;;  %v1500_v25 = vsub.f32 %v2245_v47, %v2204_v58  ;;  %vm3984_vm10 = vmmov %vm3976_vm0  ;;  %s2251_s7 = scalar_lea.vmem %s1809_s2, 32  ;;  %p2256_p1 = scmp.lt.s32.totalorder %s1809_s2, %s1809_s2 }
 0x3a5   :  { %v1499_v12 = vsub.f32 %v2246_v27, %v1318_v51  ;;  %v1328_v19 = vpop.f32.mrf.mxu1  ;;  %v1774_v26 = vsel %vm3970_vm12, %v1720_v21, 0.0  ;;  %v1772_v4 = vsel %vm3971_vm13, %v1719_v10, 0.0  ;;  %v1722_v52 = vsel %vm3731_vm9, %v1658_v2, %v1986_v53  ;;  %vm3985_vm9 = vmmov %vm3976_vm0  ;;  %p2252_p0 = scmp.ne.s32.totalorder %s1809_s2, %s2251_s7  ;;  %p2257_p2 = scmp.lt.s32.totalorder %s2251_s7, %s2251_s7 }
 0x3a6   :  { %v1561_v36 = vand.u32 2147483647, %v1529_v60  ;;  %v1625_v9 = vmul.f32 0.5, %v1529_v60  ;;  %1375 = vst.msk [vmem:[%s3820_s3 + $0xe0] sm:$0xff] %vm3972_vm2, %v1328_v19  ;;  %v1773_v6 = vadd.f32 %v1772_v4, %v1771_v32  ;;  %v1532_v38 = vmul.f32 10.0, %v1500_v25  ;;  %vm3987_vm11 = vmmov %vm3976_vm0 }
 0x3a7   :  { %v1531_v33 = vmul.f32 10.0, %v1499_v12  ;;  %v2210_v34 = vpop.f32.mrf.mxu1  ;;  %v1502_v11 = vsub.f32 %v2247_v16, %v2207_v43  ;;  %v1501_v29 = vsub.f32 %v2248_v54, %v1328_v19  ;;  %v1778_v44 = vsel %vm3980_vm15, %v1722_v52, 0.0  ;;  %vm3990_vm2 = vmmov %vm3976_vm0  ;;  %p2258_p3 = por %p2257_p2, %p2256_p1 }
 0x3a8   :  { %vm3757_vm4 = vcmp.lt.f32.partialorder %v1561_v36, 1.0  ;;  %v1657_v22 = vmul.f32 %v1625_v9, %v1529_v60  ;;  %v1985_v45 = vadd.f32 -0.5, %v1561_v36  ;;  %1378 = vst.msk [vmem:[%s3820_s3 + $0xf8] sm:$0xff] %vm3975_vm7, %v2210_v34  ;;  %v1775_v15 = vadd.f32 %v1774_v26, %v1773_v6 }
 0x3a9   :  { %v1564_v41 = vand.u32 2147483647, %v1532_v38  ;;  %v1628_v20 = vmul.f32 0.5, %v1532_v38  ;;  %v1563_v55 = vand.u32 2147483647, %v1531_v33  ;;  %v1338_v0 = vpop.f32.mrf.mxu1  ;;  %v1627_v7 = vmul.f32 0.5, %v1531_v33  ;;  %p2259_p4 = pnand %p2258_p3, %p2252_p0 }
 0x3aa   :  { %v1721_v17 = vsel %vm3757_vm4, %v1657_v22, %v1985_v45  ;;  %v1534_v30 = vmul.f32 10.0, %v1502_v11  ;;  %1377 = vst.msk [vmem:[%s3820_s3 + $0xf0] sm:$0xff] %vm3976_vm0, %v1338_v0  ;;  %v1533_v50 = vmul.f32 10.0, %v1501_v29  ;;  %v1504_v31 = vsub.f32 %v2249_v61, %v2210_v34  ;;  %vm3991_vm4 = vmmov %vm3976_vm0 }
 0x3ab   :  { %v1776_v18 = vsel %vm3977_vm6, %v1721_v17, 0.0  ;;  %vm3778_vm3 = vcmp.lt.f32.partialorder %v1564_v41, 1.0  ;;  %v1660_v57 = vmul.f32 %v1628_v20, %v1532_v38  ;;  %v1988_v1 = vadd.f32 -0.5, %v1564_v41 }
 0x3ac   :  { %v1777_v37 = vadd.f32 %v1776_v18, %v1775_v15  ;;  %vm1595_vm1 = vcmp.lt.f32.partialorder %v1563_v55, 1.0  ;;  %v1659_v3 = vmul.f32 %v1627_v7, %v1531_v33  ;;  %v1987_v46 = vadd.f32 -0.5, %v1563_v55 }
 0x3ad   :  { %v1566_v40 = vand.u32 2147483647, %v1534_v30  ;;  %v1630_v39 = vmul.f32 0.5, %v1534_v30  ;;  %v1724_v13 = vsel %vm3778_vm3, %v1660_v57, %v1988_v1  ;;  %v1565_v51 = vand.u32 2147483647, %v1533_v50 }
 0x3ae   :  { %v1723_v58 = vsel %vm1595_vm1, %v1659_v3, %v1987_v46  ;;  %v1779_v49 = vadd.f32 %v1778_v44, %v1777_v37  ;;  %v1629_v56 = vmul.f32 0.5, %v1533_v50  ;;  %v1536_v62 = vmul.f32 10.0, %v1504_v31 }
 0x3af   :  { %v1780_v63 = vsel %vm3981_vm14, %v1723_v58, 0.0  ;;  %v1662_v28 = vmul.f32 %v1630_v39, %v1534_v30  ;;  %v1990_v24 = vadd.f32 -0.5, %v1566_v40  ;;  %vm3789_vm8 = vcmp.lt.f32.partialorder %v1566_v40, 1.0 }
 0x3b0   :  { %v1781_v35 = vadd.f32 %v1780_v63, %v1779_v49  ;;  %v1503_v8 = vsub.f32 %v2250_v23, %v1338_v0  ;;  %v2296_v48 = vmov 1966171168   ;;  %v1782_v5 = vsel %vm3984_vm10, %v1724_v13, 0.0 }
 0x3b1   :  { %v1455_v32 = vunpack.c.l.s4 %v2296_v48  ;;  %vm1597_vm5 = vcmp.lt.f32.partialorder %v1565_v51, 1.0  ;;  %v1661_v43 = vmul.f32 %v1629_v56, %v1533_v50  ;;  %v1989_v21 = vadd.f32 -0.5, %v1565_v51 }
 0x3b2   :  { %v1783_v2 = vadd.f32 %v1782_v5, %v1781_v35  ;;  %v1568_v53 = vand.u32 2147483647, %v1536_v62  ;;  %v1632_v60 = vmul.f32 0.5, %v1536_v62  ;;  %v1535_v10 = vmul.f32 10.0, %v1503_v8 }
 0x3b3   :  { %v1726_v47 = vsel %vm3789_vm8, %v1662_v28, %v1990_v24  ;;  %v1725_v25 = vsel %vm1597_vm5, %v1661_v43, %v1989_v21  ;;  %v3986_v19 = vlaneseq  ;;  %v1456_v59 = vunpack.c.0.s8 %v1455_v32 }
 0x3b4   :  { %v1784_v27 = vsel %vm3985_vm9, %v1725_v25, 0.0  ;;  %v1664_v12 = vmul.f32 %v1632_v60, %v1536_v62  ;;  %v1992_v36 = vadd.f32 -0.5, %v1568_v53  ;;  %v1567_v9 = vand.u32 2147483647, %v1535_v10 }
 0x3b5   :  { %v1458_v26 = vshrl.u32 %v3986_v19, 7  ;;  %v1785_v4 = vadd.f32 %v1784_v27, %v1783_v2  ;;  %v1631_v6 = vmul.f32 0.5, %v1535_v10  ;;  %v1786_v38 = vsel %vm3987_vm11, %v1726_v47, 0.0 }
 0x3b6   :  { %v1446_v52 = vpop.f32.mrf.mxu0  ;;  %vm3802_vm12 = vcmp.lt.f32.partialorder %v1568_v53, 1.0  ;;  %vm1599_vm13 = vcmp.lt.f32.partialorder %v1567_v9, 1.0  ;;  %v1991_v45 = vadd.f32 -0.5, %v1567_v9  ;;  %vm1470_vm7 = vcmp.lt.s32.totalorder %v3986_v19, 256 }
 0x3b7   :  { %v2211_v34 = vtrunc.f32 %v1446_v52  ;;  %v1663_v22 = vmul.f32 %v1631_v6, %v1535_v10  ;;  %v1787_v11 = vadd.f32 %v1786_v38, %v1785_v4  ;;  %v1728_v20 = vsel %vm3802_vm12, %v1664_v12, %v1992_v36 }
 0x3b8   :  { %v1448_v16 = vpop.f32.mrf.mxu0  ;;  %v1459_v7 = vsub.s32 %v1456_v59, %v1458_v26  ;;  %v1790_v29 = vsel %vm3991_vm4, %v1728_v20, 0.0 }
 0x3b9   :  { %v2212_v15 = vcvt.f32.s32 %v2211_v34  ;;  %v2213_v41 = vtrunc.f32 %v1448_v16  ;;  %v1727_v55 = vsel %vm1599_vm13, %v1663_v22, %v1991_v45 }
 0x3ba   :  { %v1788_v0 = vsel %vm3990_vm2, %v1727_v55, 0.0 }
 0x3bb   :  { %v2214_v17 = vcvt.f32.s32 %v2213_v41  ;;  %v1789_v30 = vadd.f32 %v1788_v0, %v1787_v11 }
 0x3bd   :  { %v1453_v54 = vcombine.low %v2212_v15, %v2214_v17  ;;  %v1791_v18 = vadd.f32 %v1790_v29, %v1789_v30 }
 0x3bf   :  { %v1460_v42 = vrot.slane %v1453_v54, %v1459_v7  ;;  %v1792_v57 = vrot.slane %v1791_v18, 4 }
 0x3c1   :  { %v1467_v1 = vrot.slane %v1460_v42, %v1459_v7  ;;  %v1793_v37 = vadd.f32 %v1792_v57, %v1791_v18 }
 0x3c3   :  { %1472 = vst.msk [vmem:[#allocation2] sm:$0x3] %vm1470_vm7, %v1467_v1 }
 0x3c4   :  { %2262 = shalt.err (!%p2259_p4)
}
 0x3c5   :  { %1811 = dma.vmem_to_hbm [thread:$0]  %s1809_s2, 32, %s3821_s4, [#allocation3]   ;;  %v1794_v3 = vrot.slane %v1793_v37, 2  ;;  %vm1798_vm0 = vcmask 253952  }
 0x3c6   :  { %s2298_s10 = smov [#allocation4]  }
 0x3c7   :  { %v1795_v46 = vadd.f32 %v1794_v3, %v1793_v37  ;;  %s1818_s11 = sshll.u32 %s2298_s10, 4  ;;  %s1819_s11 = int_to_ptr.vmem [resolvable:$true] %s1818_s11 }
 0x3c8   :  { %s2271_s12 = scalar_lea.vmem %s1819_s11, 16  ;;  %s2275_s13 = scalar_lea.vmem %s1819_s11, 32 }
 0x3c9   :  { %v1796_v44 = vrot.slane %v1795_v46, 1  ;;  %p2272_p5 = scmp.ne.s32.totalorder %s1819_s11, %s2271_s12  ;;  %p2276_p6 = scmp.lt.s32.totalorder %s1819_s11, %s1819_s11 }
 0x3ca   :  { %p2277_p7 = scmp.lt.s32.totalorder %s2275_s13, %s2271_s12 }
 0x3cb   :  { %v1797_v40 = vadd.f32 %v1796_v44, %v1795_v46 }
 0x3cc   :  { %p2278_p8 = por %p2277_p7, %p2276_p6 }
 0x3cd   :  { %1799 = vst.msk [vmem:[#allocation4] sm:$0x1] %vm1798_vm0, %v1797_v40 }
 0x3ce   :  { %p2279_p9 = pnand %p2278_p8, %p2272_p5 }
 0x3d0   :  { %2282 = shalt.err (!%p2279_p9)
}
 0x3d1   :  { %1821 = dma.vmem_to_hbm [thread:$0]  %s1819_s11, 16, %s3822_s5, [#allocation5]  }
 0x3d2   :  { %2291 = dma.done.wait [#allocation3], 32  }
 0x3d3   :  { %2292 = vsyncadd [#allocation3], 4294967264 }
 0x3d4   :  { %2293 = dma.done.wait [#allocation5], 16  }
 0x3d5   :  { %2294 = vsyncadd [#allocation5], 4294967280 }
 0x3d6   :  { %1830 = vsyncpa [#allocation3], 1 }
 0x3d7   :  { %1831 = vsyncpa [#allocation5], 1 }

</bundles_post_ra>
